<compile_context>
chip_gen: v7x
topology: tpu7x:2x2x1
jax: 0.10.0
libtpu: 0.0.40
codegen_flags: <defaults>
</compile_context>

<pallas_src>
import functools

import jax
import jax.numpy as jnp
from jax.experimental import pallas as pl
from jax.experimental.pallas import tpu as pltpu


def _sigmoid(z):
    # Single EUP tanh op; mathematically identical to 1/(1+exp(-z)).
    return 0.5 * (jnp.tanh(0.5 * z) + 1.0)


def _gate_and_output(out_x, out_y, wo_ref, bo_ref, out_refs, *,
                     x_gate, return_projections):
    # Gate (EUP) + elementwise product (VPU) + output projection (MXU).
    if x_gate:
        fused = _sigmoid(out_x) * out_y
    else:
        fused = out_x * _sigmoid(out_y)

    out = jnp.dot(fused.astype(wo_ref.dtype), wo_ref[...],
                  preferred_element_type=jnp.float32) + bo_ref[...]

    if return_projections:
        out_x_ref, out_y_ref, out_ref = out_refs
        out_x_ref[...] = out_x.astype(out_x_ref.dtype)
        out_y_ref[...] = out_y.astype(out_y_ref.dtype)
    else:
        (out_ref,) = out_refs
    out_ref[...] = out.astype(out_ref.dtype)


def _split_proj_kernel(x_ref, y_ref, wx_ref, bx_ref, wy_ref, by_ref,
                       wo_ref, bo_ref, *out_refs, x_gate, compute_dtype,
                       return_projections):
    # Two MXU matmuls, f32 accumulation.  Inputs cast to compute_dtype inside
    # VMEM (no wrapper-side astype -> no extra HBM round trip of x/y).
    xc = x_ref[...].astype(compute_dtype)
    yc = y_ref[...].astype(compute_dtype)
    out_x = jnp.dot(xc, wx_ref[...], preferred_element_type=jnp.float32) + bx_ref[...]
    out_y = jnp.dot(yc, wy_ref[...], preferred_element_type=jnp.float32) + by_ref[...]
    _gate_and_output(out_x, out_y, wo_ref, bo_ref, out_refs,
                     x_gate=x_gate, return_projections=return_projections)


def _fused_proj_kernel(xy_ref, wxy_ref, bxy_ref, wo_ref, bo_ref, *out_refs,
                       x_gate, dim, compute_dtype, return_projections):
    # [x | y] @ [[wx, 0], [0, wy]] = [out_x | out_y] in ONE MXU pass (fills the
    # 256x256 MXU on v6e/v7x).  The input is pre-concatenated by the wrapper
    # (no in-kernel concat burning the vector-store slot); dim % 128 == 0 is
    # enforced so the two output-half lane slices below are free views.
    xy = xy_ref[...].astype(compute_dtype)
    proj = jnp.dot(xy, wxy_ref[...], preferred_element_type=jnp.float32) + bxy_ref[...]
    out_x = proj[:, :dim]
    out_y = proj[:, dim:]
    _gate_and_output(out_x, out_y, wo_ref, bo_ref, out_refs,
                     x_gate=x_gate, return_projections=return_projections)


def _nbytes(shape, dtype):
    n = 1
    for s in shape:
        n *= int(s)
    return n * jnp.dtype(dtype).itemsize


def _round_up(v, m):
    return ((v + m - 1) // m) * m


def _vmem_capacity_bytes():
    try:
        return int(pltpu.get_tpu_info().vmem_capacity_bytes)
    except Exception:
        return 64 << 20   # assume the smallest (v7x: 64 MiB / TensorCore)


def _pick_tile_m(B, tile_m):
    """Pick a sublane-aligned tile with >= 2 (preferably even) grid steps."""
    if B <= 8:
        return B
    tile_m = max(8, (min(tile_m, _round_up(pl.cdiv(B, 2), 8)) // 8) * 8)
    steps = pl.cdiv(B, tile_m)
    if steps > 1 and steps % 2 == 1:
        # Best-effort: shrink the tile so the step count becomes even
        # (keeps both v7x TensorCores busy under dimension_semantics=parallel).
        cand = max(8, _round_up(pl.cdiv(B, steps + 1), 8))
        if pl.cdiv(B, cand) % 2 == 0:
            tile_m = cand
    return tile_m


def gated_fusion(x, y, params, *, x_gate=True, tile_m=512,
                 fuse_projections=False, return_projections=True,
                 compute_dtype=None, proj_dtype=None, out_dtype=None):
    """Gated multimodal fusion (matches GatedFusion.forward -> (out_x, out_y, out)).

    params: wx/wy (input_dim, dim), wo (dim, output_dim) -- already transposed
    vs. torch nn.Linear -- and bx/by (1, dim), bo (1, output_dim).

    compute_dtype      : matmul input dtype (e.g. jnp.bfloat16 on v6e/v7x whose
                         MXU is bf16-native).  Accumulation / bias / gate math
                         stay in f32.  Cast happens inside the kernel.
    return_projections : False drops the out_x/out_y HBM writeback (~3x less
                         store traffic) when only the fused output is needed.
    proj_dtype         : dtype of the out_x/out_y writeback (bf16 halves it).
    fuse_projections   : opt-in single-matmul projection (v6e/v7x 256x256 MXU);
                         silently falls back to split projections when dims are
                         not 128-aligned or the block-diagonal weight would not
                         fit comfortably in VMEM (v7x: 64 MiB/TC).
    """
    B, input_dim = x.shape
    dim = params["wx"].shape[1]
    output_dim = params["wo"].shape[1]
    cdt = compute_dtype if compute_dtype is not None else x.dtype
    out_dtype = out_dtype if out_dtype is not None else x.dtype
    proj_dtype = proj_dtype if proj_dtype is not None else out_dtype

    # ---- batch tiling: >= 2 (preferably even) grid steps ----
    tile_m = _pick_tile_m(B, tile_m)
    grid = (pl.cdiv(B, tile_m),)

    vmem_cap = _vmem_capacity_bytes()

    # ---- fused-projection eligibility ----
    fuse = bool(fuse_projections) and (input_dim % 128 == 0) and (dim % 128 == 0)
    if fuse:
        fused_w_bytes = 2 * (_nbytes((2 * input_dim, 2 * dim), cdt)
                             + _nbytes((dim, output_dim), cdt))
        if fused_w_bytes > vmem_cap // 3:
            fuse = False   # block-diagonal weight too big -> split projections

    # ---- parameter packing (weights are small; biases kept f32) ----
    wx = params["wx"].astype(cdt)
    wy = params["wy"].astype(cdt)
    wo = params["wo"].astype(cdt)
    bx = params["bx"].astype(jnp.float32).reshape(1, dim)
    by = params["by"].astype(jnp.float32).reshape(1, dim)
    bo = params["bo"].astype(jnp.float32).reshape(1, output_dim)

    row_spec = lambda rows, cols: pl.BlockSpec((rows, cols), lambda i: (i, 0))
    const_spec = lambda rows, cols: pl.BlockSpec((rows, cols), lambda i: (0, 0))

    if fuse:
        # NOTE: with weights that change every step (training), pass a
        # pre-packed params["wxy"] to avoid re-materializing this scatter in
        # HBM each call; with frozen inference weights it constant-folds.
        if "wxy" in params:
            wxy = params["wxy"].astype(cdt)
        else:
            wxy = jnp.zeros((2 * input_dim, 2 * dim), cdt)
            wxy = wxy.at[:input_dim, :dim].set(wx).at[input_dim:, dim:].set(wy)
        bxy = jnp.concatenate([bx, by], axis=1)
        xy = jnp.concatenate([x, y], axis=-1)   # wrapper-side, one row stream

        kernel = functools.partial(_fused_proj_kernel, x_gate=x_gate, dim=dim,
                                   compute_dtype=cdt,
                                   return_projections=return_projections)
        stream_args = (xy,)
        stream_specs = [row_spec(tile_m, 2 * input_dim)]
        weight_args = (wxy, bxy, wo, bo)
        weight_specs = [const_spec(2 * input_dim, 2 * dim),
                        const_spec(1, 2 * dim),
                        const_spec(dim, output_dim),
                        const_spec(1, output_dim)]
    else:
        kernel = functools.partial(_split_proj_kernel, x_gate=x_gate,
                                   compute_dtype=cdt,
                                   return_projections=return_projections)
        stream_args = (x, y)
        stream_specs = [row_spec(tile_m, input_dim), row_spec(tile_m, input_dim)]
        weight_args = (wx, bx, wy, by, wo, bo)
        weight_specs = [const_spec(input_dim, dim), const_spec(1, dim),
                        const_spec(input_dim, dim), const_spec(1, dim),
                        const_spec(dim, output_dim), const_spec(1, output_dim)]

    in_specs = stream_specs + weight_specs

    out_shapes, out_specs = [], []
    if return_projections:
        out_shapes += [jax.ShapeDtypeStruct((B, dim), proj_dtype)] * 2
        out_specs += [row_spec(tile_m, dim)] * 2
    out_shapes.append(jax.ShapeDtypeStruct((B, output_dim), out_dtype))
    out_specs.append(row_spec(tile_m, output_dim))

    # ---- honest VMEM accounting: streamed tiles and weights are both
    #      double-buffered by the pipeline; add the f32 in-kernel intermediates
    #      and a small margin.  No artificial floor; only pass
    #      vmem_limit_bytes if we exceed the default scoped limit, capped well
    #      under the chip's physical VMEM. ----
    need = sum(2 * _nbytes((tile_m, a.shape[1]), a.dtype) for a in stream_args)
    need += sum(2 * _nbytes((tile_m, s.shape[1]), s.dtype) for s in out_shapes)
    need += sum(2 * _nbytes(w.shape, w.dtype) for w in weight_args)
    need += 6 * tile_m * max(dim, output_dim) * 4      # f32 intermediates
    need += 2 << 20                                    # margin

    cp_kwargs = dict(dimension_semantics=("parallel",))
    if need > (16 << 20):                              # smallest default scoped limit (v5e)
        cp_kwargs["vmem_limit_bytes"] = int(min(need, 0.75 * vmem_cap))

    outs = pl.pallas_call(
        kernel,
        grid=grid,
        in_specs=in_specs,
        out_specs=tuple(out_specs),
        out_shape=tuple(out_shapes),
        compiler_params=pltpu.CompilerParams(**cp_kwargs),
    )(*stream_args, *weight_args)

    if return_projections:
        out_x, out_y, out = outs
        return out_x, out_y, out
    return outs[0]


def _reference(x, y, params, *, x_gate=True):
    out_x = x @ params["wx"] + params["bx"]
    out_y = y @ params["wy"] + params["by"]
    if x_gate:
        fused = jax.nn.sigmoid(out_x) * out_y
    else:
        fused = out_x * jax.nn.sigmoid(out_y)
    out = fused @ params["wo"] + params["bo"]
    return out_x, out_y, out


if __name__ == "__main__":
    # Small, lane-aligned shapes consistent with the module (stacked nn.Linear).
    B, INPUT_DIM, DIM, OUTPUT_DIM = 512, 128, 128, 128

    key = jax.random.PRNGKey(0)
    kx, ky, k1, k2, k3, k4, k5, k6 = jax.random.split(key, 8)

    x = jax.random.normal(kx, (B, INPUT_DIM), dtype=jnp.float32)
    y = jax.random.normal(ky, (B, INPUT_DIM), dtype=jnp.float32)

    # Deterministic synthetic params (~nn.Linear default scale 1/sqrt(fan_in)).
    s_in = 1.0 / jnp.sqrt(jnp.float32(INPUT_DIM))
    s_dim = 1.0 / jnp.sqrt(jnp.float32(DIM))
    params = {
        "wx": jax.random.uniform(k1, (INPUT_DIM, DIM), jnp.float32, -s_in, s_in),
        "bx": jax.random.uniform(k2, (1, DIM), jnp.float32, -s_in, s_in),
        "wy": jax.random.uniform(k3, (INPUT_DIM, DIM), jnp.float32, -s_in, s_in),
        "by": jax.random.uniform(k4, (1, DIM), jnp.float32, -s_in, s_in),
        "wo": jax.random.uniform(k5, (DIM, OUTPUT_DIM), jnp.float32, -s_dim, s_dim),
        "bo": jax.random.uniform(k6, (1, OUTPUT_DIM), jnp.float32, -s_dim, s_dim),
    }

    ref_x, ref_y, ref_o = _reference(x, y, params, x_gate=True)
    _, _, ref_o_ng = _reference(x, y, params, x_gate=False)

    def close(a, b, tol):
        return bool(jnp.allclose(a.astype(jnp.float32), b, atol=tol, rtol=tol))

    # Both the kernel and the XLA reference run their matmuls on the MXU with
    # default (bf16-pass) precision; tolerances account for that rounding.
    TOL_F32, TOL_BF16 = 1e-2, 5e-2

    # 1) Default path: split projections, f32 compute, full 3-output return
    #    (matches GatedFusion.forward).  B=512 -> 2 even grid steps of 256.
    out_x, out_y, out = jax.block_until_ready(
        gated_fusion(x, y, params, x_gate=True))
    assert close(out_x, ref_x, TOL_F32)
    assert close(out_y, ref_y, TOL_F32)
    assert close(out, ref_o, TOL_F32)

    # 2) Opt-in fused single-matmul projection path (v6e/v7x 256x256 MXU).
    f_x, f_y, f_o = jax.block_until_ready(
        gated_fusion(x, y, params, x_gate=True, fuse_projections=True))
    assert close(f_x, ref_x, TOL_F32)
    assert close(f_y, ref_y, TOL_F32)
    assert close(f_o, ref_o, TOL_F32)

    # 3) Output-only (no out_x/out_y HBM writeback), x_gate=False.
    out_only = jax.block_until_ready(
        gated_fusion(x, y, params, x_gate=False, return_projections=False))
    assert close(out_only, ref_o_ng, TOL_F32)

    # 4) bf16 matmuls (f32 accumulation) + bf16 projection writeback.
    b_x, b_y, b_o = jax.block_until_ready(
        gated_fusion(x, y, params, x_gate=True,
                     compute_dtype=jnp.bfloat16, proj_dtype=jnp.bfloat16))
    assert close(b_x, ref_x, TOL_BF16)
    assert close(b_y, ref_y, TOL_BF16)
    assert close(b_o, ref_o, TOL_BF16)

    print("KERNEL_OK")
</pallas_src>

<mosaic_0001>
module attributes {stable_mosaic.version = 11 : i64} {
  func.func @_split_proj_kernel(%arg0: i32, %arg1: memref<256x128xf32, #tpu.memory_space<vmem>>, %arg2: memref<256x128xf32, #tpu.memory_space<vmem>>, %arg3: memref<128x128xf32, #tpu.memory_space<vmem>>, %arg4: memref<1x128xf32, #tpu.memory_space<vmem>>, %arg5: memref<128x128xf32, #tpu.memory_space<vmem>>, %arg6: memref<1x128xf32, #tpu.memory_space<vmem>>, %arg7: memref<128x128xf32, #tpu.memory_space<vmem>>, %arg8: memref<1x128xf32, #tpu.memory_space<vmem>>, %arg9: memref<256x128xf32, #tpu.memory_space<vmem>>, %arg10: memref<256x128xf32, #tpu.memory_space<vmem>>, %arg11: memref<256x128xf32, #tpu.memory_space<vmem>>) attributes {dimension_semantics = [#tpu.dimension_semantics<parallel>], iteration_bounds = array<i64: 2>, scalar_prefetch = 0 : i64, scratch_operands = 0 : i64, tpu.core_type = #tpu.core_type<tc>, window_params = [{transform_indices = @transform_0, window_bounds = array<i64: 256, 128>}, {transform_indices = @transform_1, window_bounds = array<i64: 256, 128>}, {pipeline_mode = #tpu.pipeline_mode<synchronous>, transform_indices = @transform_2, window_bounds = array<i64: 128, 128>}, {pipeline_mode = #tpu.pipeline_mode<synchronous>, transform_indices = @transform_3, window_bounds = array<i64: 1, 128>}, {pipeline_mode = #tpu.pipeline_mode<synchronous>, transform_indices = @transform_4, window_bounds = array<i64: 128, 128>}, {pipeline_mode = #tpu.pipeline_mode<synchronous>, transform_indices = @transform_5, window_bounds = array<i64: 1, 128>}, {pipeline_mode = #tpu.pipeline_mode<synchronous>, transform_indices = @transform_6, window_bounds = array<i64: 128, 128>}, {pipeline_mode = #tpu.pipeline_mode<synchronous>, transform_indices = @transform_7, window_bounds = array<i64: 1, 128>}, {transform_indices = @transform_8, window_bounds = array<i64: 256, 128>}, {transform_indices = @transform_9, window_bounds = array<i64: 256, 128>}, {transform_indices = @transform_10, window_bounds = array<i64: 256, 128>}]} {
    %c0 = arith.constant 0 : index
    %c0_0 = arith.constant 0 : index
    %0 = vector.load %arg1[%c0, %c0_0] : memref<256x128xf32, #tpu.memory_space<vmem>>, vector<256x128xf32>
    %c0_1 = arith.constant 0 : index
    %c0_2 = arith.constant 0 : index
    %1 = vector.load %arg2[%c0_1, %c0_2] : memref<256x128xf32, #tpu.memory_space<vmem>>, vector<256x128xf32>
    %c0_3 = arith.constant 0 : index
    %c0_4 = arith.constant 0 : index
    %2 = vector.load %arg3[%c0_3, %c0_4] : memref<128x128xf32, #tpu.memory_space<vmem>>, vector<128x128xf32>
    %cst = arith.constant dense<0.000000e+00> : vector<256x128xf32>
    %3 = tpu.matmul %0, %2, %cst {dimension_numbers = #tpu.dot_dimension_numbers<[1], [0], [0], [1], [0, 0, 1, 1], [], []>} : vector<256x128xf32>, vector<128x128xf32>, vector<256x128xf32> -> vector<256x128xf32>
    %c0_5 = arith.constant 0 : index
    %c0_6 = arith.constant 0 : index
    %4 = vector.load %arg4[%c0_5, %c0_6] : memref<1x128xf32, #tpu.memory_space<vmem>>, vector<1x128xf32>
    %5 = vector.broadcast %4 : vector<1x128xf32> to vector<256x128xf32>
    %6 = arith.addf %3, %5 : vector<256x128xf32>
    %c0_7 = arith.constant 0 : index
    %c0_8 = arith.constant 0 : index
    %7 = vector.load %arg5[%c0_7, %c0_8] : memref<128x128xf32, #tpu.memory_space<vmem>>, vector<128x128xf32>
    %cst_9 = arith.constant dense<0.000000e+00> : vector<256x128xf32>
    %8 = tpu.matmul %1, %7, %cst_9 {dimension_numbers = #tpu.dot_dimension_numbers<[1], [0], [0], [1], [0, 0, 1, 1], [], []>} : vector<256x128xf32>, vector<128x128xf32>, vector<256x128xf32> -> vector<256x128xf32>
    %c0_10 = arith.constant 0 : index
    %c0_11 = arith.constant 0 : index
    %9 = vector.load %arg6[%c0_10, %c0_11] : memref<1x128xf32, #tpu.memory_space<vmem>>, vector<1x128xf32>
    %10 = vector.broadcast %9 : vector<1x128xf32> to vector<256x128xf32>
    %11 = arith.addf %8, %10 : vector<256x128xf32>
    %cst_12 = arith.constant 5.000000e-01 : f32
    %12 = vector.broadcast %cst_12 : f32 to vector<256x128xf32>
    %13 = arith.mulf %12, %6 : vector<256x128xf32>
    %14 = math.tanh %13 : vector<256x128xf32>
    %cst_13 = arith.constant 1.000000e+00 : f32
    %15 = vector.broadcast %cst_13 : f32 to vector<256x128xf32>
    %16 = arith.addf %14, %15 : vector<256x128xf32>
    %cst_14 = arith.constant 5.000000e-01 : f32
    %17 = vector.broadcast %cst_14 : f32 to vector<256x128xf32>
    %18 = arith.mulf %17, %16 : vector<256x128xf32>
    %19 = arith.mulf %18, %11 : vector<256x128xf32>
    %c0_15 = arith.constant 0 : index
    %c0_16 = arith.constant 0 : index
    %20 = vector.load %arg7[%c0_15, %c0_16] : memref<128x128xf32, #tpu.memory_space<vmem>>, vector<128x128xf32>
    %cst_17 = arith.constant dense<0.000000e+00> : vector<256x128xf32>
    %21 = tpu.matmul %19, %20, %cst_17 {dimension_numbers = #tpu.dot_dimension_numbers<[1], [0], [0], [1], [0, 0, 1, 1], [], []>} : vector<256x128xf32>, vector<128x128xf32>, vector<256x128xf32> -> vector<256x128xf32>
    %c0_18 = arith.constant 0 : index
    %c0_19 = arith.constant 0 : index
    %22 = vector.load %arg8[%c0_18, %c0_19] : memref<1x128xf32, #tpu.memory_space<vmem>>, vector<1x128xf32>
    %23 = vector.broadcast %22 : vector<1x128xf32> to vector<256x128xf32>
    %24 = arith.addf %21, %23 : vector<256x128xf32>
    %c0_20 = arith.constant 0 : index
    %c0_21 = arith.constant 0 : index
    %25 = vector.load %arg9[%c0_20, %c0_21] : memref<256x128xf32, #tpu.memory_space<vmem>>, vector<256x128xf32>
    tpu.vector_store %arg9[%c0_20, %c0_21], %6 {strides = array<i32>} : memref<256x128xf32, #tpu.memory_space<vmem>>, vector<256x128xf32>,
    %c0_22 = arith.constant 0 : index
    %c0_23 = arith.constant 0 : index
    %26 = vector.load %arg10[%c0_22, %c0_23] : memref<256x128xf32, #tpu.memory_space<vmem>>, vector<256x128xf32>
    tpu.vector_store %arg10[%c0_22, %c0_23], %11 {strides = array<i32>} : memref<256x128xf32, #tpu.memory_space<vmem>>, vector<256x128xf32>,
    %c0_24 = arith.constant 0 : index
    %c0_25 = arith.constant 0 : index
    %27 = vector.load %arg11[%c0_24, %c0_25] : memref<256x128xf32, #tpu.memory_space<vmem>>, vector<256x128xf32>
    tpu.vector_store %arg11[%c0_24, %c0_25], %24 {strides = array<i32>} : memref<256x128xf32, #tpu.memory_space<vmem>>, vector<256x128xf32>,
    return
  }
  func.func @transform_0(%arg0: i32) -> (i32, i32) {
    %c0_i32 = arith.constant 0 : i32
    %c0_i32_0 = arith.constant 0 : i32
    return %arg0, %c0_i32 : i32, i32
  }
  func.func @transform_1(%arg0: i32) -> (i32, i32) {
    %c0_i32 = arith.constant 0 : i32
    %c0_i32_0 = arith.constant 0 : i32
    return %arg0, %c0_i32 : i32, i32
  }
  func.func @transform_2(%arg0: i32) -> (i32, i32) {
    %c0_i32 = arith.constant 0 : i32
    %c0_i32_0 = arith.constant 0 : i32
    %c0_i32_1 = arith.constant 0 : i32
    return %c0_i32, %c0_i32_0 : i32, i32
  }
  func.func @transform_3(%arg0: i32) -> (i32, i32) {
    %c0_i32 = arith.constant 0 : i32
    %c0_i32_0 = arith.constant 0 : i32
    %c0_i32_1 = arith.constant 0 : i32
    return %c0_i32, %c0_i32_0 : i32, i32
  }
  func.func @transform_4(%arg0: i32) -> (i32, i32) {
    %c0_i32 = arith.constant 0 : i32
    %c0_i32_0 = arith.constant 0 : i32
    %c0_i32_1 = arith.constant 0 : i32
    return %c0_i32, %c0_i32_0 : i32, i32
  }
  func.func @transform_5(%arg0: i32) -> (i32, i32) {
    %c0_i32 = arith.constant 0 : i32
    %c0_i32_0 = arith.constant 0 : i32
    %c0_i32_1 = arith.constant 0 : i32
    return %c0_i32, %c0_i32_0 : i32, i32
  }
  func.func @transform_6(%arg0: i32) -> (i32, i32) {
    %c0_i32 = arith.constant 0 : i32
    %c0_i32_0 = arith.constant 0 : i32
    %c0_i32_1 = arith.constant 0 : i32
    return %c0_i32, %c0_i32_0 : i32, i32
  }
  func.func @transform_7(%arg0: i32) -> (i32, i32) {
    %c0_i32 = arith.constant 0 : i32
    %c0_i32_0 = arith.constant 0 : i32
    %c0_i32_1 = arith.constant 0 : i32
    return %c0_i32, %c0_i32_0 : i32, i32
  }
  func.func @transform_8(%arg0: i32) -> (i32, i32) {
    %c0_i32 = arith.constant 0 : i32
    %c0_i32_0 = arith.constant 0 : i32
    return %arg0, %c0_i32 : i32, i32
  }
  func.func @transform_9(%arg0: i32) -> (i32, i32) {
    %c0_i32 = arith.constant 0 : i32
    %c0_i32_0 = arith.constant 0 : i32
    return %arg0, %c0_i32 : i32, i32
  }
  func.func @transform_10(%arg0: i32) -> (i32, i32) {
    %c0_i32 = arith.constant 0 : i32
    %c0_i32_0 = arith.constant 0 : i32
    return %arg0, %c0_i32 : i32, i32
  }
}

</mosaic_0001>

<bundles_post_ra>
// kernel: tpu_custom_call.1
= control target key start
LH: loop header
LB: loop body
LE: loop exit
PB: predicated region body
PF: predicated region fallthrough
CT: control target
= control target key end

     0   :  { %s3590_s0 = inlined_call_operand.hbm [shape: f32[512,128], index: 0, kind: input, shape index: {}]   ;;  %s3591_s1 = inlined_call_operand.hbm [shape: f32[512,128], index: 1, kind: input, shape index: {}]   ;;  %s3592_s2 = inlined_call_operand.hbm [shape: f32[128,128], index: 2, kind: input, shape index: {}]   ;;  %s3593_s3 = inlined_call_operand.vmem [shape: f32[1,128], index: 3, kind: input, shape index: {}]   ;;  %s3594_s4 = inlined_call_operand.hbm [shape: f32[128,128], index: 4, kind: input, shape index: {}]   ;;  %s3595_s5 = inlined_call_operand.vmem [shape: f32[1,128], index: 5, kind: input, shape index: {}]   ;;  %s3596_s6 = inlined_call_operand.hbm [shape: f32[128,128], index: 6, kind: input, shape index: {}]   ;;  %s3597_s7 = inlined_call_operand.vmem [shape: f32[1,128], index: 7, kind: input, shape index: {}]   ;;  %s3598_s8 = inlined_call_operand.hbm [shape: f32[512,128], index: 8, kind: output, shape index: {0}]   ;;  %s3599_s9 = inlined_call_operand.hbm [shape: f32[512,128], index: 9, kind: output, shape index: {1}]   ;;  %s3600_s10 = inlined_call_operand.hbm [shape: f32[512,128], index: 10, kind: output, shape index: {2}]  }
   0x1   :  { %3612 = sst [smem:[#allocation24_spill]] %s3590_s0 }
   0x2   :  { %3613 = sst [smem:[#allocation25_spill]] %s3592_s2 }
   0x3   :  { %3614 = sst [smem:[#allocation26_spill]] %s3594_s4 }
   0x4   :  { %3615 = sst [smem:[#allocation27_spill]] %s3596_s6 }
   0x5   :  { %3616 = sst [smem:[#allocation28_spill]] %s3597_s7 }
   0x6   :  { %3617 = sst [smem:[#allocation29_spill]] %s3600_s10 }
   0x7   :  { %16 = vsyncpa [#allocation3], 0 }
   0x8   :  { %18 = vsyncpa [#allocation3 + $0x1], 0 }
   0x9   :  { %19 = vsyncpa [#allocation6], 0 }
   0xa   :  { %21 = vsyncpa [#allocation6 + $0x1], 0 }
   0xb   :  { %22 = vsyncpa [#allocation9], 0 }
   0xc   :  { %23 = vsyncpa [#allocation4], 0 }
   0xd   :  { %25 = vsyncpa [#allocation4 + $0x1], 0 }
   0xe   :  { %26 = vsyncpa [#allocation13], 0 }
   0xf   :  { %28 = vsyncpa [#allocation13 + $0x1], 0  ;;  %s2836_s13 = smov 0   ;;  %s2838_s14 = smov 0  }
  0x10   :  { %s2840_s15 = smov 0   ;;  %s2842_s16 = smov 0  }
  0x11 LB: > { %3618 = sst [smem:[#allocation21_spill]] %s2755_s13  ;;  %s2857_s17 = sadd.s32 4294967295, %s2767_s16   ;;  %s2767_s16 = sphi %s2842_s16, %s3652_s16   ;;  %s2763_s15 = sphi %s2840_s15, %s3651_s15   ;;  %s2759_s14 = sphi %s2838_s14, %s3650_s14   ;;  %s2755_s13 = sphi %s2836_s13, %s3649_s13  }
  0x12   : > { %s3601_s18 = sadd.s32 4294967294, %s2767_s16   ;;  %p54_p0 = scmp.ne.s32.totalorder %s2759_s14, %s2755_s13 }
  0x13   : > { %p3602_p1 = scmp.eq.s32.totalorder %s2857_s17, 0  ;;  %p236_p3 = scmp.eq.s32.totalorder %s3601_s18, 1 }
  0x14   : > { %p1790_p5 = scmp.ge.s32.totalorder %s2767_s16, 1  ;;  %p295_p7 = scmp.lt.s32.totalorder %s2767_s16, 3 }
  0x15   : > { %p2868_p4 = por %p3602_p1, %p54_p0  ;;  %p2873_p6 = por %p236_p3, %p54_p0 }
  0x16   : > { %p2878_p8 = pnand %p1790_p5, %p295_p7  ;;  %s2769_s22 = smov [#allocation7]  }
  0x17   : > { %s3619_s19 = scalar_select %p2868_p4, 1, 0 }
  0x18   : > { %s3620_s20 = scalar_select %p2873_p6, 1, 0 }
  0x19   : > { %s3622_s21 = scalar_select %p2878_p8, 1, 0 }
  0x1a   : > { %3621 = sst [smem:[#allocation22_spill]] %s3620_s20  ;;  %s307_s23 = sshll.u32 %s2769_s22, 4  ;;  %s2882_s23 = int_to_ptr.vmem [resolvable:$true] %s307_s23 }
  0x1b   : > { %p2347_p9 = pneg %p2878_p8  ;;  %s2770_s25 = smov [#allocation8]  }
  0x1c   : > { %s323_s26 = sshll.u32 %s2770_s25, 4  ;;  %s2771_s27 = smov [#allocation10]   ;;  %s2893_s26 = int_to_ptr.vmem [resolvable:$true] %s323_s26 }
  0x1d   : > { %p2889_p11 = pnand %p2347_p9, %p3602_p1  ;;  %s2895_s28 = sshll.u32 %s2771_s27, 4  ;;  %s340_s28 = int_to_ptr.vmem [resolvable:$true] %s2895_s28 }
  0x1e   : > { %s3624_s2 = sld [smem:[#allocation25_spill]] }
  0x1f   : > { %p2905_p13 = pneg %p2889_p11 }
  0x24   : > { %s2485_s11 = scalar_lea.hbm %s3624_s2, 2048 }
  0x25   : > { %p2486_p12 = scmp.ne.s32.totalorder %s3624_s2, %s2485_s11  ;;  %p2492_p5 = scmp.lt.u32.totalorder %s2485_s11, %s3624_s2 }
  0x27   : > { %p2488_p0 = pnand %p2905_p13, %p2486_p12 }
  0x29   : > { %p2489_p3 = pneg %p2488_p0 }
  0x2b   : > { %p2494_p7 = pnand %p2492_p5, %p2489_p3 }
  0x2d   : > { %2497 = shalt.err (!%p2494_p7)
}
  0x2e   : > { %s2498_s29 = scalar_lea.vmem %s2882_s23, 2048  ;;  %p2506_p2 = scmp.lt.s32.totalorder %s2882_s23, %s2882_s23 }
  0x2f   : > { %p2499_p9 = scmp.ne.s32.totalorder %s2882_s23, %s2498_s29  ;;  %p2507_p6 = scmp.lt.s32.totalorder %s2498_s29, %s2498_s29 }
  0x31   : > { %p2501_p10 = pnand %p2499_p9, %p2905_p13  ;;  %p2508_p12 = por %p2507_p6, %p2506_p2 }
  0x33   : > { %p2502_p1 = pneg %p2501_p10 }
  0x35   : > { %p2509_p0 = pnand %p2508_p12, %p2502_p1 }
  0x37   : > { %2512 = shalt.err (!%p2509_p0)
}
  0x38   : > { %s3608_s30 = smov 128   ;;  %s3610_s11 = smov 8  }
  0x39   : > { %2350 = dma.hbm_to_vmem [thread:$0]  (!%p2889_p11), %s3624_s2, 2048, %s2882_s23, [#allocation6], %s3608_s30, %s3608_s30, %s3610_s11  }
  0x3a   : > { %s3626_s4 = sld [smem:[#allocation26_spill]] }
  0x40   : > { %s2513_s29 = scalar_lea.hbm %s3626_s4, 2048 }
  0x41   : > { %p2514_p1 = scmp.ne.s32.totalorder %s3626_s4, %s2513_s29  ;;  %p2520_p10 = scmp.lt.u32.totalorder %s2513_s29, %s3626_s4 }
  0x43   : > { %p2516_p2 = pnand %p2514_p1, %p2905_p13 }
  0x45   : > { %p2517_p6 = pneg %p2516_p2 }
  0x47   : > { %p2522_p3 = pnand %p2520_p10, %p2517_p6 }
  0x49   : > { %2525 = shalt.err (!%p2522_p3)
}
  0x4a   : > { %s2526_s23 = scalar_lea.vmem %s2893_s26, 2048  ;;  %p2534_p12 = scmp.lt.s32.totalorder %s2893_s26, %s2893_s26 }
  0x4b   : > { %p2527_p5 = scmp.ne.s32.totalorder %s2893_s26, %s2526_s23  ;;  %p2535_p0 = scmp.lt.s32.totalorder %s2526_s23, %s2526_s23 }
  0x4d   : > { %p2529_p7 = pnand %p2527_p5, %p2905_p13  ;;  %p2536_p1 = por %p2535_p0, %p2534_p12 }
  0x4f   : > { %p2530_p9 = pneg %p2529_p7 }
  0x51   : > { %p2537_p2 = pnand %p2536_p1, %p2530_p9 }
  0x53   : > { %2540 = shalt.err (!%p2537_p2)
}
  0x54   : > { %2353 = dma.hbm_to_vmem [thread:$0]  (!%p2889_p11), %s3626_s4, 2048, %s2893_s26, [#allocation9], %s3608_s30, %s3608_s30, %s3610_s11  }
  0x55   : > { %s3627_s6 = sld [smem:[#allocation27_spill]] }
  0x5b   : > { %s2541_s12 = scalar_lea.hbm %s3627_s6, 2048 }
  0x5c   : > { %p2542_p6 = scmp.ne.s32.totalorder %s3627_s6, %s2541_s12  ;;  %p2548_p5 = scmp.lt.u32.totalorder %s2541_s12, %s3627_s6 }
  0x5e   : > { %p2544_p10 = pnand %p2542_p6, %p2905_p13 }
  0x60   : > { %p2545_p3 = pneg %p2544_p10 }
  0x62   : > { %p2550_p7 = pnand %p2548_p5, %p2545_p3 }
  0x64   : > { %2553 = shalt.err (!%p2550_p7)
}
  0x65   : > { %s2554_s23 = scalar_lea.vmem %s340_s28, 2048  ;;  %p2562_p1 = scmp.lt.s32.totalorder %s340_s28, %s340_s28 }
  0x66   : > { %p2555_p9 = scmp.ne.s32.totalorder %s340_s28, %s2554_s23  ;;  %p2563_p2 = scmp.lt.s32.totalorder %s2554_s23, %s2554_s23 }
  0x68   : > { %p2557_p12 = pnand %p2555_p9, %p2905_p13  ;;  %p2564_p4 = por %p2563_p2, %p2562_p1 }
  0x6a   : > { %p2558_p0 = pneg %p2557_p12 }
  0x6c   : > { %p2565_p8 = pnand %p2564_p4, %p2558_p0 }
  0x6e   : > { %2568 = shalt.err (!%p2565_p8)
}
  0x6f   : > { %2356 = dma.hbm_to_vmem [thread:$0]  (!%p2889_p11), %s3627_s6, 2048, %s340_s28, [#allocation9], %s3608_s30, %s3608_s30, %s3610_s11  }
  0x70   : > { %s2978_s18 = sadd.s32 1, %s2767_s16   ;;  %s41_s10 = sadd.s32 1, %s2763_s15 }
  0x71   : > { %s38_s24 = ssub.s32 %s2767_s16, %s2978_s18  ;;  %p48_p8 = scmp.ne.s32.totalorder %s2763_s15, %s2759_s14 }
  0x72   : > { %p39_p4 = scmp.eq.s32.totalorder %s38_s24, 0  ;;  %p49_p13 = scmp.eq.s32.totalorder %s2767_s16, 0 }
  0x73   : > { %p2377_p6 = scmp.lt.s32.totalorder %s2767_s16, 2  ;;  %p3629_p3 = scmp.eq.s32.totalorder %s2857_s17, 1 }
  0x74   : > { %s2988_s13 = scalar_select %p39_p4, %s2763_s15, %s41_s10  }
  0x75   : > { %p50_p10 = por %p49_p13, %p48_p8  ;;  %p2992_p5 = por %p3629_p3, %p48_p8 }
  0x76   : > { %3628 = sst [smem:[#allocation23_spill]] %s2988_s13  ;;  %s356_s12 = sand.u32 1, %s2763_s15  }
  0x77   : > { %s1824_s22 = sshll.u32 %s2767_s16, 12  ;;  %s2998_s28 = sshll.u32 %s356_s12, 8 }
  0x78   : > { %s3631_s0 = sld [smem:[#allocation24_spill]]  ;;  %s360_s23 = scalar_lea.vmem [#allocation2], %s2998_s28 }
  0x79   : > { %s367_s26 = sshll.u32 %s360_s23, 4  ;;  %p3006_p11 = pnand %p2377_p6, %p50_p10  ;;  %s3010_s26 = int_to_ptr.vmem [resolvable:$true] %s367_s26 }
  0x7a   : > { %s3015_s25 = scalar_lea.hbm %s3591_s1, %s1824_s22  ;;  %s3017_s27 = scalar_lea.sflag [#allocation3], %s356_s12 }
  0x7b   : > { %p2571_p9 = pneg %p3006_p11 }
  0x7e   : > { %s3003_s29 = scalar_lea.hbm %s3631_s0, %s1824_s22  ;;  %s2574_s2 = scalar_lea.hbm %s3631_s0, 8192 }
  0x7f   : > { %s2569_s30 = scalar_lea.hbm %s3003_s29, 4096  ;;  %p2575_p1 = scmp.lt.u32.totalorder %s3003_s29, %s3631_s0 }
  0x80   : > { %p2570_p7 = scmp.ne.s32.totalorder %s3003_s29, %s2569_s30  ;;  %p2576_p2 = scmp.lt.u32.totalorder %s2574_s2, %s2569_s30 }
  0x81   : > { %p2578_p8 = scmp.lt.u32.totalorder %s2569_s30, %s3003_s29 }
  0x82   : > { %p2572_p12 = pnand %p2571_p9, %p2570_p7  ;;  %p2577_p4 = por %p2576_p2, %p2575_p1 }
  0x84   : > { %p2573_p0 = pneg %p2572_p12  ;;  %p2579_p13 = por %p2578_p8, %p2577_p4 }
  0x86   : > { %p2580_p6 = pnand %p2579_p13, %p2573_p0 }
  0x88   : > { %2583 = shalt.err (!%p2580_p6)
}
  0x89   : > { %s2584_s12 = scalar_lea.vmem %s3010_s26, 4096  ;;  %s2774_s11 = smov [#allocation2]  }
  0x8a   : > { %p2585_p10 = scmp.ne.s32.totalorder %s3010_s26, %s2584_s12  ;;  %s2589_s22 = sshll.u32 %s2774_s11, 4  ;;  %s2590_s22 = int_to_ptr.vmem [resolvable:$false] %s2589_s22 }
  0x8b   : > { %s2591_s4 = scalar_lea.vmem %s2590_s22, 8192  ;;  %p2592_p12 = scmp.lt.s32.totalorder %s3010_s26, %s2590_s22 }
  0x8c   : > { %p2587_p3 = pnand %p2585_p10, %p2571_p9  ;;  %p2593_p1 = scmp.lt.s32.totalorder %s2591_s4, %s2584_s12 }
  0x8e   : > { %p2588_p7 = pneg %p2587_p3  ;;  %p2594_p2 = por %p2593_p1, %p2592_p12 }
  0x90   : > { %p2595_p4 = pnand %p2594_p2, %p2588_p7 }
  0x92   : > { %2598 = shalt.err (!%p2595_p4)
}
  0x93   : > { %s3633_s2 = smov 8   ;;  %s3634_s6 = smov 128  }
  0x94   : > { %2360 = dma.hbm_to_vmem [thread:$0]  (!%p3006_p11), %s3003_s29, 4096, %s3010_s26, %s3017_s27, %s3634_s6, %s3634_s6, %s3633_s2  }
  0x95   : > { %s381_s30 = scalar_lea.vmem [#allocation5], %s2998_s28  ;;  %s377_s10 = sand.u32 1, %s2767_s16  }
  0x96   : > { %s388_s24 = sshll.u32 %s381_s30, 4  ;;  %s3052_s23 = scalar_lea.sflag [#allocation6], %s377_s10  ;;  %s3050_s24 = int_to_ptr.vmem [resolvable:$true] %s388_s24 }
  0x97   : > { %s2599_s12 = scalar_lea.hbm %s3015_s25, 4096  ;;  %s2604_s4 = scalar_lea.hbm %s3591_s1, 8192 }
  0x98   : > { %p2600_p0 = scmp.ne.s32.totalorder %s3015_s25, %s2599_s12  ;;  %p2605_p6 = scmp.lt.u32.totalorder %s3015_s25, %s3591_s1 }
  0x99   : > { %p2606_p10 = scmp.lt.u32.totalorder %s2604_s4, %s2599_s12  ;;  %p2608_p7 = scmp.lt.u32.totalorder %s2599_s12, %s3015_s25 }
  0x9a   : > { %p2602_p8 = pnand %p2600_p0, %p2571_p9 }
  0x9b   : > { %p2607_p3 = por %p2606_p10, %p2605_p6 }
  0x9c   : > { %p2603_p13 = pneg %p2602_p8 }
  0x9d   : > { %p2609_p12 = por %p2608_p7, %p2607_p3 }
  0x9f   : > { %p2610_p1 = pnand %p2609_p12, %p2603_p13 }
  0xa1   : > { %2613 = shalt.err (!%p2610_p1)
}
  0xa2   : > { %s2614_s28 = scalar_lea.vmem %s3050_s24, 4096  ;;  %s2775_s29 = smov [#allocation5]  }
  0xa3   : > { %p2615_p2 = scmp.ne.s32.totalorder %s3050_s24, %s2614_s28  ;;  %s2619_s26 = sshll.u32 %s2775_s29, 4  ;;  %s2620_s26 = int_to_ptr.vmem [resolvable:$false] %s2619_s26 }
  0xa4   : > { %s2621_s0 = scalar_lea.vmem %s2620_s26, 8192  ;;  %p2622_p8 = scmp.lt.s32.totalorder %s3050_s24, %s2620_s26 }
  0xa5   : > { %p2617_p4 = pnand %p2615_p2, %p2571_p9  ;;  %p2623_p6 = scmp.lt.s32.totalorder %s2621_s0, %s2614_s28 }
  0xa7   : > { %p2618_p0 = pneg %p2617_p4  ;;  %p2624_p10 = por %p2623_p6, %p2622_p8 }
  0xa9   : > { %p2625_p3 = pnand %p2624_p10, %p2618_p0 }
  0xab   : > { %2628 = shalt.err (!%p2625_p3)
}
  0xac   : > { %2363 = dma.hbm_to_vmem [thread:$0]  (!%p3006_p11), %s3015_s25, 4096, %s3050_s24, %s3052_s23, %s3634_s6, %s3634_s6, %s3633_s2  }
  0xad   : > { %p3635_p9 = scmp.ne.s32.totalorder %s3622_s21, 0 }
  0xae   : > { %s3084_s13 = sand.u32 (!%p3635_p9), 1, %s2759_s14   ;;  %p3636_p13 = scmp.ne.s32.totalorder (!%p3635_p9), %s3619_s19, 0 }
  0xaf   : > { %400 = sbr.rel (%p3635_p9) target bundleno = 767 (0x2ff), region = 52  ;;  %s3087_s27 = sshll.u32 (!%p3635_p9), %s3084_s13, 8 }
  0xb0   : > { %s403_s7 = scalar_lea.sflag (!%p3635_p9), [#allocation3], %s3084_s13  ;;  %s3091_s30 = scalar_lea.vmem (!%p3635_p9), [#allocation2], %s3087_s27 }
  0xb6   : > { %2730 = dma.done.wait (%p3636_p13), %s403_s7, 4096  }
  0xb7   : > { %2732 = vsyncadd (%p3636_p13), %s403_s7, 4294963200  ;;  %s411_s21 = sand.u32 1, %s2857_s17   ;;  %s3101_s2 = scalar_lea.vmem [#allocation5], %s3087_s27 }
  0xb8   : > { %s412_s25 = scalar_lea.sflag [#allocation6], %s411_s21 }
  0xb9   : > { %2734 = dma.done.wait (%p3636_p13), %s412_s25, 4096  }
  0xba   : > { %2736 = vsyncadd (%p3636_p13), %s412_s25, 4294963200  ;;  %p3637_p11 = scmp.eq.s32.totalorder %s2857_s17, 0 }
  0xbc   : > { %2738 = dma.done.wait (%p3637_p11), [#allocation6], 2048   ;;  %p3638_p7 = pmov %p3637_p11 }
  0xbe   : > { %2740 = vsyncadd (%p3638_p7), [#allocation6], 4294965248  ;;  %p3639_p12 = pmov %p3638_p7 }
  0xbf   : > { %p3640_p1 = pmov %p3638_p7 }
  0xc0   : > { %2742 = dma.done.wait (%p3639_p12), [#allocation9], 4096  }
  0xc1   : > { %2744 = vsyncadd (%p3640_p1), [#allocation9], 4294963200  ;;  %v548_v0 = vld [vmem:[#allocation7] sm:$0xff]  ;;  %v549_v1 = vld [vmem:[#allocation7 + $0x8] sm:$0xff]  ;;  %s3193_s24 = scalar_lea.vmem [#allocation11], %s3087_s27  ;;  %s3307_s12 = scalar_lea.vmem [#allocation12], %s3087_s27 }
  0xc2   : > { %v550_v2 = vld [vmem:[#allocation7 + $0x10] sm:$0xff]  ;;  %v2213_v3 = vpack.c.bf16 %v549_v1, %v548_v0  ;;  %v551_v4 = vld [vmem:[#allocation7 + $0x18] sm:$0xff]  ;;  %v552_v6 = vld [vmem:[#allocation7 + $0x20] sm:$0xff]  ;;  %s3388_s11 = sshll.u32 %s2857_s17, 12  ;;  %s1588_s29 = sshll.u32 %s3307_s12, 4  ;;  %s3397_s29 = int_to_ptr.vmem [resolvable:$true] %s1588_s29 }
  0xc3   : > { %v2217_v5 = vpack.c.bf16 %v551_v4, %v550_v2  ;;  %v553_v7 = vld [vmem:[#allocation7 + $0x28] sm:$0xff]  ;;  %v500_v9 = vld [vmem:[%s3091_s30 + $0x80] sm:$0xff]  ;;  %v554_v10 = vld [vmem:[#allocation7 + $0x30] sm:$0xff]  ;;  %s3394_s28 = scalar_lea.hbm %s3599_s9, %s3388_s11  ;;  %s3401_s26 = scalar_lea.sflag [#allocation13], %s411_s21 }
  0xc4   : > { %2309 = vmatprep.subr.bf16.mxu1 %v2213_v3  ;;  %2214 = vmatprep.subr.bf16.mxu0 %v2213_v3  ;;  %v2221_v8 = vpack.c.bf16 %v553_v7, %v552_v6  ;;  %v555_v11 = vld [vmem:[#allocation7 + $0x38] sm:$0xff]  ;;  %v556_v13 = vld [vmem:[#allocation7 + $0x40] sm:$0xff]  ;;  %v557_v14 = vld [vmem:[#allocation7 + $0x48] sm:$0xff]  ;;  %s2629_s0 = scalar_lea.vmem %s3397_s29, 4096  ;;  %s2776_s7 = smov [#allocation12]  }
  0xc5   : > { %2317 = vmatpush3.bf16.msra.mxu1 %v2213_v3  ;;  %2216 = vmatpush3.bf16.msra.mxu0 %v2213_v3  ;;  %v2225_v12 = vpack.c.bf16 %v555_v11, %v554_v10  ;;  %v484_v15 = vld [vmem:[%s3091_s30] sm:$0xff]  ;;  %v2229_v16 = vpack.c.bf16 %v557_v14, %v556_v13  ;;  %v558_v17 = vld [vmem:[#allocation7 + $0x50] sm:$0xff]  ;;  %v559_v18 = vld [vmem:[#allocation7 + $0x58] sm:$0xff]  ;;  %p2630_p2 = scmp.ne.s32.totalorder %s3397_s29, %s2629_s0 }
  0xc6   : > { %2310 = vmatprep.subr.bf16.mxu1 %v2217_v5  ;;  %2218 = vmatprep.subr.bf16.mxu0 %v2217_v5  ;;  %v2233_v19 = vpack.c.bf16 %v559_v18, %v558_v17  ;;  %v560_v20 = vld [vmem:[#allocation7 + $0x60] sm:$0xff]  ;;  %v561_v21 = vld [vmem:[#allocation7 + $0x68] sm:$0xff]  ;;  %v562_v23 = vld [vmem:[#allocation7 + $0x70] sm:$0xff] }
  0xc7   : > { %2029 = vmatprep.mubr.f32.mxu1 %v500_v9  ;;  %2005 = vmatprep.mubr.f32.mxu0 %v484_v15  ;;  %v2237_v22 = vpack.c.bf16 %v561_v21, %v560_v20  ;;  %v563_v24 = vld [vmem:[#allocation7 + $0x78] sm:$0xff]  ;;  %v796_v26 = vld [vmem:[#allocation8] sm:$0xff]  ;;  %v797_v27 = vld [vmem:[#allocation8 + $0x8] sm:$0xff]  ;;  %p2631_p4 = pnand %p2630_p2, %p2992_p5 }
  0xc8   : > { %v2241_v25 = vpack.c.bf16 %v563_v24, %v562_v23  ;;  %v2245_v28 = vpack.c.bf16 %v797_v27, %v796_v26  ;;  %v798_v29 = vld [vmem:[#allocation8 + $0x10] sm:$0xff]  ;;  %v799_v30 = vld [vmem:[#allocation8 + $0x18] sm:$0xff]  ;;  %v501_v31 = vld [vmem:[%s3091_s30 + $0x88] sm:$0xff] }
  0xc9   : > { %2318 = vmatpush3.bf16.msra.mxu1 %v2217_v5  ;;  %2220 = vmatpush3.bf16.msra.mxu0 %v2217_v5  ;;  %v485_v32 = vld [vmem:[%s3091_s30 + $0x8] sm:$0xff]  ;;  %v502_v33 = vld [vmem:[%s3091_s30 + $0x90] sm:$0xff]  ;;  %v2249_v34 = vpack.c.bf16 %v799_v30, %v798_v29  ;;  %v800_v35 = vld [vmem:[#allocation8 + $0x20] sm:$0xff]  ;;  %p2632_p0 = pneg %p2631_p4 }
  0xca   : > { %2311 = vmatprep.subr.bf16.mxu1 %v2221_v8  ;;  %2222 = vmatprep.subr.bf16.mxu0 %v2221_v8  ;;  %v801_v36 = vld [vmem:[#allocation8 + $0x28] sm:$0xff]  ;;  %v486_v37 = vld [vmem:[%s3091_s30 + $0x10] sm:$0xff]  ;;  %v503_v38 = vld [vmem:[%s3091_s30 + $0x98] sm:$0xff] }
  0xcb   : > { %v487_v39 = vld [vmem:[%s3091_s30 + $0x18] sm:$0xff]  ;;  %v504_v40 = vld [vmem:[%s3091_s30 + $0xa0] sm:$0xff]  ;;  %v2253_v41 = vpack.c.bf16 %v801_v36, %v800_v35  ;;  %v802_v42 = vld [vmem:[#allocation8 + $0x30] sm:$0xff] }
  0xcc   : > { %v803_v43 = vld [vmem:[#allocation8 + $0x38] sm:$0xff]  ;;  %v488_v44 = vld [vmem:[%s3091_s30 + $0x20] sm:$0xff]  ;;  %v505_v45 = vld [vmem:[%s3091_s30 + $0xa8] sm:$0xff] }
  0xcd   : > { %2319 = vmatpush3.bf16.msra.mxu1 %v2221_v8  ;;  %2224 = vmatpush3.bf16.msra.mxu0 %v2221_v8  ;;  %v489_v46 = vld [vmem:[%s3091_s30 + $0x28] sm:$0xff]  ;;  %v506_v47 = vld [vmem:[%s3091_s30 + $0xb0] sm:$0xff]  ;;  %v2257_v48 = vpack.c.bf16 %v803_v43, %v802_v42  ;;  %v804_v49 = vld [vmem:[#allocation8 + $0x40] sm:$0xff] }
  0xce   : > { %2312 = vmatprep.subr.bf16.mxu1 %v2225_v12  ;;  %2226 = vmatprep.subr.bf16.mxu0 %v2225_v12  ;;  %v805_v50 = vld [vmem:[#allocation8 + $0x48] sm:$0xff]  ;;  %v490_v51 = vld [vmem:[%s3091_s30 + $0x30] sm:$0xff]  ;;  %v507_v52 = vld [vmem:[%s3091_s30 + $0xb8] sm:$0xff] }
  0xcf   : > { %v491_v53 = vld [vmem:[%s3091_s30 + $0x38] sm:$0xff]  ;;  %v508_v54 = vld [vmem:[%s3091_s30 + $0xc0] sm:$0xff]  ;;  %v2261_v55 = vpack.c.bf16 %v805_v50, %v804_v49  ;;  %v806_v56 = vld [vmem:[#allocation8 + $0x50] sm:$0xff] }
  0xd0   : > { %v807_v57 = vld [vmem:[#allocation8 + $0x58] sm:$0xff]  ;;  %v492_v58 = vld [vmem:[%s3091_s30 + $0x40] sm:$0xff]  ;;  %v509_v59 = vld [vmem:[%s3091_s30 + $0xc8] sm:$0xff] }
  0xd1   : > { %2320 = vmatpush3.bf16.msra.mxu1 %v2225_v12  ;;  %2228 = vmatpush3.bf16.msra.mxu0 %v2225_v12  ;;  %v493_v60 = vld [vmem:[%s3091_s30 + $0x48] sm:$0xff]  ;;  %v510_v61 = vld [vmem:[%s3091_s30 + $0xd0] sm:$0xff]  ;;  %v2265_v62 = vpack.c.bf16 %v807_v57, %v806_v56  ;;  %v808_v63 = vld [vmem:[#allocation8 + $0x60] sm:$0xff] }
  0xd2   : > { %2313 = vmatprep.subr.bf16.mxu1 %v2229_v16  ;;  %2230 = vmatprep.subr.bf16.mxu0 %v2229_v16  ;;  %v809_v0 = vld [vmem:[#allocation8 + $0x68] sm:$0xff]  ;;  %v494_v1 = vld [vmem:[%s3091_s30 + $0x50] sm:$0xff]  ;;  %v511_v2 = vld [vmem:[%s3091_s30 + $0xd8] sm:$0xff] }
  0xd3   : > { %v495_v3 = vld [vmem:[%s3091_s30 + $0x58] sm:$0xff]  ;;  %v512_v4 = vld [vmem:[%s3091_s30 + $0xe0] sm:$0xff]  ;;  %v2269_v5 = vpack.c.bf16 %v809_v0, %v808_v63  ;;  %v810_v6 = vld [vmem:[#allocation8 + $0x70] sm:$0xff] }
  0xd4   : > { %v811_v7 = vld [vmem:[#allocation8 + $0x78] sm:$0xff]  ;;  %v496_v8 = vld [vmem:[%s3091_s30 + $0x60] sm:$0xff]  ;;  %v513_v9 = vld [vmem:[%s3091_s30 + $0xe8] sm:$0xff] }
  0xd5   : > { %2321 = vmatpush3.bf16.msra.mxu1 %v2229_v16  ;;  %2232 = vmatpush3.bf16.msra.mxu0 %v2229_v16  ;;  %v497_v10 = vld [vmem:[%s3091_s30 + $0x68] sm:$0xff]  ;;  %v514_v11 = vld [vmem:[%s3091_s30 + $0xf0] sm:$0xff]  ;;  %v2273_v12 = vpack.c.bf16 %v811_v7, %v810_v6  ;;  %v515_v14 = vld [vmem:[%s3091_s30 + $0xf8] sm:$0xff] }
  0xd6   : > { %2314 = vmatprep.subr.bf16.mxu1 %v2233_v19  ;;  %2234 = vmatprep.subr.bf16.mxu0 %v2233_v19  ;;  %v498_v13 = vld [vmem:[%s3091_s30 + $0x70] sm:$0xff]  ;;  %v499_v15 = vld [vmem:[%s3091_s30 + $0x78] sm:$0xff]  ;;  %v516_v16 = vld [vmem:[%s3101_s2] sm:$0xff]  ;;  %s2633_s30 = sshll.u32 %s2776_s7, 4  ;;  %s2634_s30 = int_to_ptr.vmem [resolvable:$false] %s2633_s30 }
  0xd7   : > { %v517_v17 = vld [vmem:[%s3101_s2 + $0x8] sm:$0xff]  ;;  %v518_v18 = vld [vmem:[%s3101_s2 + $0x10] sm:$0xff]  ;;  %v520_v20 = vld [vmem:[%s3101_s2 + $0x20] sm:$0xff]  ;;  %s2635_s25 = scalar_lea.vmem %s2634_s30, 8192  ;;  %p2636_p8 = scmp.lt.s32.totalorder %s3397_s29, %s2634_s30 }
  0xd8   : > { %v521_v21 = vld [vmem:[%s3101_s2 + $0x28] sm:$0xff]  ;;  %v523_v23 = vld [vmem:[%s3101_s2 + $0x38] sm:$0xff]  ;;  %v524_v24 = vld [vmem:[%s3101_s2 + $0x40] sm:$0xff]  ;;  %p2637_p6 = scmp.lt.s32.totalorder %s2635_s25, %s2629_s0 }
  0xd9   : > { %2322 = vmatpush3.bf16.msra.mxu1 %v2233_v19  ;;  %2236 = vmatpush3.bf16.msra.mxu0 %v2233_v19  ;;  %v519_v19 = vld [vmem:[%s3101_s2 + $0x18] sm:$0xff]  ;;  %v526_v26 = vld [vmem:[%s3101_s2 + $0x50] sm:$0xff]  ;;  %v529_v29 = vld [vmem:[%s3101_s2 + $0x68] sm:$0xff] }
  0xda   : > { %2315 = vmatprep.subr.bf16.mxu1 %v2237_v22  ;;  %2238 = vmatprep.subr.bf16.mxu0 %v2237_v22  ;;  %v527_v27 = vld [vmem:[%s3101_s2 + $0x58] sm:$0xff]  ;;  %v530_v30 = vld [vmem:[%s3101_s2 + $0x70] sm:$0xff]  ;;  %v536_v36 = vld [vmem:[%s3101_s2 + $0xa0] sm:$0xff]  ;;  %p2638_p10 = por %p2637_p6, %p2636_p8 }
  0xdb   : > { %v535_v35 = vld [vmem:[%s3101_s2 + $0x98] sm:$0xff]  ;;  %v542_v42 = vld [vmem:[%s3101_s2 + $0xd0] sm:$0xff] }
  0xdc   : > { %v543_v43 = vld [vmem:[%s3101_s2 + $0xd8] sm:$0xff]  ;;  %v1210_v57 = vld [vmem:[#allocation10 + $0x30] sm:$0xff]  ;;  %p2639_p3 = pnand %p2638_p10, %p2632_p0 }
  0xdd   : > { %2323 = vmatpush3.bf16.msra.mxu1 %v2237_v22  ;;  %2240 = vmatpush3.bf16.msra.mxu0 %v2237_v22  ;;  %v522_v22 = vld [vmem:[%s3101_s2 + $0x30] sm:$0xff]  ;;  %v547_v50 = vld [vmem:[%s3101_s2 + $0xf8] sm:$0xff] }
  0xde   : > { %2316 = vmatprep.subr.bf16.mxu1 %v2241_v25  ;;  %2242 = vmatprep.subr.bf16.mxu0 %v2241_v25  ;;  %v1214_v63 = vld [vmem:[#allocation10 + $0x50] sm:$0xff]  ;;  %v1215_v0 = vld [vmem:[#allocation10 + $0x58] sm:$0xff] }
  0xdf   : > { %v1219_v6 = vld [vmem:[#allocation10 + $0x78] sm:$0xff] }
  0xe1   : > { %2324 = vmatpush3.bf16.msra.mxu1 %v2241_v25  ;;  %2244 = vmatpush3.bf16.msra.mxu0 %v2241_v25  ;;  %v525_v25 = vld [vmem:[%s3101_s2 + $0x48] sm:$0xff] }
  0xe2   : > { %2246 = vmatprep.subr.bf16.mxu1 %v2245_v28 }
  0xe4   : > { %2030 = vmatmul.mubr.f32.vlgmr.msra.gmra.mrb[0].mxu1 %v501_v31  ;;  %2006 = vmatmul.mubr.f32.vlgmr.msra.gmra.mrb[0].mxu0 %v485_v32  ;;  %v531_v31 = vld [vmem:[%s3101_s2 + $0x78] sm:$0xff]  ;;  %v532_v32 = vld [vmem:[%s3101_s2 + $0x80] sm:$0xff] }
  0xe5   : > { %2248 = vmatpush3.bf16.msra.mxu1 %v2245_v28  ;;  %2032 = vmatprep.mubr.f32.mxu1 %v502_v33  ;;  %v528_v28 = vld [vmem:[%s3101_s2 + $0x60] sm:$0xff]  ;;  %v533_v33 = vld [vmem:[%s3101_s2 + $0x88] sm:$0xff] }
  0xe6   : > { %2250 = vmatprep.subr.bf16.mxu1 %v2249_v34  ;;  %2008 = vmatprep.mubr.f32.mxu0 %v486_v37  ;;  %v537_v37 = vld [vmem:[%s3101_s2 + $0xa8] sm:$0xff] }
  0xe8   : > { %2033 = vmatmul.mubr.f32.gmra.mrb[2].mxu1 %v503_v38  ;;  %2009 = vmatmul.mubr.f32.gmra.mrb[2].mxu0 %v487_v39  ;;  %v538_v38 = vld [vmem:[%s3101_s2 + $0xb0] sm:$0xff]  ;;  %v539_v39 = vld [vmem:[%s3101_s2 + $0xb8] sm:$0xff] }
  0xe9   : > { %2252 = vmatpush3.bf16.msra.mxu1 %v2249_v34  ;;  %2035 = vmatprep.mubr.f32.mxu1 %v504_v40  ;;  %v534_v34 = vld [vmem:[%s3101_s2 + $0x90] sm:$0xff]  ;;  %v540_v40 = vld [vmem:[%s3101_s2 + $0xc0] sm:$0xff] }
  0xea   : > { %2254 = vmatprep.subr.bf16.mxu1 %v2253_v41  ;;  %2011 = vmatprep.mubr.f32.mxu0 %v488_v44  ;;  %v544_v44 = vld [vmem:[%s3101_s2 + $0xe0] sm:$0xff] }
  0xec   : > { %2036 = vmatmul.mubr.f32.gmra.mrb[4].mxu1 %v505_v45  ;;  %2012 = vmatmul.mubr.f32.gmra.mrb[4].mxu0 %v489_v46  ;;  %v545_v45 = vld [vmem:[%s3101_s2 + $0xe8] sm:$0xff]  ;;  %v546_v46 = vld [vmem:[%s3101_s2 + $0xf0] sm:$0xff] }
  0xed   : > { %2256 = vmatpush3.bf16.msra.mxu1 %v2253_v41  ;;  %2038 = vmatprep.mubr.f32.mxu1 %v506_v47  ;;  %v541_v41 = vld [vmem:[%s3101_s2 + $0xc8] sm:$0xff]  ;;  %v1204_v47 = vld [vmem:[#allocation10] sm:$0xff] }
  0xee   : > { %2258 = vmatprep.subr.bf16.mxu1 %v2257_v48  ;;  %2014 = vmatprep.mubr.f32.mxu0 %v490_v51  ;;  %v1206_v51 = vld [vmem:[#allocation10 + $0x10] sm:$0xff] }
  0xf0   : > { %2039 = vmatmul.mubr.f32.gmra.mrb[6].mxu1 %v507_v52  ;;  %2015 = vmatmul.mubr.f32.gmra.mrb[6].mxu0 %v491_v53  ;;  %v1207_v52 = vld [vmem:[#allocation10 + $0x18] sm:$0xff] }
  0xf1   : > { %2260 = vmatpush3.bf16.msra.mxu1 %v2257_v48  ;;  %2041 = vmatprep.mubr.f32.mxu1 %v508_v54  ;;  %v1205_v48 = vld [vmem:[#allocation10 + $0x8] sm:$0xff]  ;;  %v2281_v53 = vpack.c.bf16 %v1207_v52, %v1206_v51  ;;  %v1208_v54 = vld [vmem:[#allocation10 + $0x20] sm:$0xff] }
  0xf2   : > { %2262 = vmatprep.subr.bf16.mxu1 %v2261_v55  ;;  %2017 = vmatprep.mubr.f32.mxu0 %v492_v58  ;;  %v2277_v49 = vpack.c.bf16 %v1205_v48, %v1204_v47  ;;  %v1211_v58 = vld [vmem:[#allocation10 + $0x38] sm:$0xff] }
  0xf4   : > { %2042 = vmatmul.mubr.f32.gmra.mrb[8].mxu1 %v509_v59  ;;  %2018 = vmatmul.mubr.f32.gmra.mrb[8].mxu0 %v493_v60  ;;  %v2289_v59 = vpack.c.bf16 %v1211_v58, %v1210_v57  ;;  %v1212_v60 = vld [vmem:[#allocation10 + $0x40] sm:$0xff] }
  0xf5   : > { %2264 = vmatpush3.bf16.msra.mxu1 %v2261_v55  ;;  %2044 = vmatprep.mubr.f32.mxu1 %v510_v61  ;;  %v1209_v55 = vld [vmem:[#allocation10 + $0x28] sm:$0xff] }
  0xf6   : > { %2266 = vmatprep.subr.bf16.mxu1 %v2265_v62  ;;  %2020 = vmatprep.mubr.f32.mxu0 %v494_v1  ;;  %v2285_v56 = vpack.c.bf16 %v1209_v55, %v1208_v54  ;;  %v1213_v61 = vld [vmem:[#allocation10 + $0x48] sm:$0xff]  ;;  %v2297_v1 = vpack.c.bf16 %v1215_v0, %v1214_v63 }
  0xf7   : > { %2278 = vmatprep.subr.bf16.mxu0 %v2277_v49 }
  0xf8   : > { %2045 = vmatmul.mubr.f32.gmra.mrb[10].mxu1 %v511_v2  ;;  %2021 = vmatmul.mubr.f32.gmra.mrb[10].mxu0 %v495_v3  ;;  %v1216_v2 = vld [vmem:[#allocation10 + $0x60] sm:$0xff]  ;;  %v1217_v3 = vld [vmem:[#allocation10 + $0x68] sm:$0xff] }
  0xf9   : > { %2268 = vmatpush3.bf16.msra.mxu1 %v2265_v62  ;;  %2047 = vmatprep.mubr.f32.mxu1 %v512_v4  ;;  %v2293_v62 = vpack.c.bf16 %v1213_v61, %v1212_v60  ;;  %v2301_v4 = vpack.c.bf16 %v1217_v3, %v1216_v2 }
  0xfa   : > { %2270 = vmatprep.subr.bf16.mxu1 %v2269_v5  ;;  %2023 = vmatprep.mubr.f32.mxu0 %v496_v8  ;;  %v3182_v8 = vld [vmem:[%s3593_s3] ss:$0 sm:$0xff] }
  0xfb   : > { %2280 = vmatpush3.bf16.msra.mxu0 %v2277_v49 }
  0xfc   : > { %2048 = vmatmul.mubr.f32.gmra.mrb[12].mxu1 %v513_v9  ;;  %2024 = vmatmul.mubr.f32.gmra.mrb[12].mxu0 %v497_v10 }
  0xfd   : > { %2272 = vmatpush3.bf16.msra.mxu1 %v2269_v5  ;;  %2050 = vmatprep.mubr.f32.mxu1 %v514_v11  ;;  %v1218_v5 = vld [vmem:[#allocation10 + $0x70] sm:$0xff] }
  0xfe   : > { %2274 = vmatprep.subr.bf16.mxu1 %v2273_v12  ;;  %2026 = vmatprep.mubr.f32.mxu0 %v498_v13  ;;  %v2305_v7 = vpack.c.bf16 %v1219_v6, %v1218_v5 }
  0xff   : > { %2282 = vmatprep.subr.bf16.mxu0 %v2281_v53 }
 0x100   : > { %2051 = vmatmul.mubr.f32.gmra.mrb[14].mxu1 %v515_v14  ;;  %2027 = vmatmul.mubr.f32.gmra.mrb[14].mxu0 %v499_v15 }
 0x101   : > { %2276 = vmatpush3.bf16.msra.mxu1 %v2273_v12  ;;  %2085 = vmatprep.mubr.f32.mxu1 %v516_v16 }
 0x102   : > { %2284 = vmatpush3.bf16.msra.mxu0 %v2281_v53 }
 0x103   : > { %2286 = vmatprep.subr.bf16.mxu0 %v2285_v56 }
 0x104   : > { %2086 = vmatmul.mubr.f32.vlgmr.msra.gmra.mrb[16].mxu1 %v517_v17 }
 0x105   : > { %2088 = vmatprep.mubr.f32.mxu1 %v518_v18 }
 0x106   : > { %2288 = vmatpush3.bf16.msra.mxu0 %v2285_v56 }
 0x107   : > { %2290 = vmatprep.subr.bf16.mxu0 %v2289_v59 }
 0x108   : > { %2089 = vmatmul.mubr.f32.gmra.mrb[18].mxu1 %v519_v19 }
 0x109   : > { %2091 = vmatprep.mubr.f32.mxu1 %v520_v20 }
 0x10a   : > { %2292 = vmatpush3.bf16.msra.mxu0 %v2289_v59 }
 0x10b   : > { %2294 = vmatprep.subr.bf16.mxu0 %v2293_v62 }
 0x10c   : > { %2092 = vmatmul.mubr.f32.gmra.mrb[20].mxu1 %v521_v21 }
 0x10d   : > { %2094 = vmatprep.mubr.f32.mxu1 %v522_v22 }
 0x10e   : > { %2296 = vmatpush3.bf16.msra.mxu0 %v2293_v62 }
 0x10f   : > { %2298 = vmatprep.subr.bf16.mxu0 %v2297_v1 }
 0x110   : > { %2095 = vmatmul.mubr.f32.gmra.mrb[22].mxu1 %v523_v23 }
 0x111   : > { %2097 = vmatprep.mubr.f32.mxu1 %v524_v24 }
 0x112   : > { %2300 = vmatpush3.bf16.msra.mxu0 %v2297_v1 }
 0x113   : > { %2302 = vmatprep.subr.bf16.mxu0 %v2301_v4 }
 0x114   : > { %2098 = vmatmul.mubr.f32.gmra.mrb[24].mxu1 %v525_v25 }
 0x115   : > { %2100 = vmatprep.mubr.f32.mxu1 %v526_v26 }
 0x116   : > { %2304 = vmatpush3.bf16.msra.mxu0 %v2301_v4 }
 0x117   : > { %2306 = vmatprep.subr.bf16.mxu0 %v2305_v7 }
 0x118   : > { %2101 = vmatmul.mubr.f32.gmra.mrb[26].mxu1 %v527_v27 }
 0x119   : > { %2103 = vmatprep.mubr.f32.mxu1 %v528_v28 }
 0x11a   : > { %2308 = vmatpush3.bf16.msra.mxu0 %v2305_v7 }
 0x11c   : > { %2104 = vmatmul.mubr.f32.gmra.mrb[28].mxu1 %v529_v29 }
 0x11d   : > { %2106 = vmatprep.mubr.f32.mxu1 %v530_v30 }
 0x120   : > { %2107 = vmatmul.mubr.f32.gmra.mrb[30].mxu1 %v531_v31 }
 0x121   : > { %2109 = vmatprep.mubr.f32.mxu1 %v532_v32 }
 0x124   : > { %2110 = vmatmul.mubr.f32.gmra.mrb[32].mxu1 %v533_v33 }
 0x125   : > { %2112 = vmatprep.mubr.f32.mxu1 %v534_v34 }
 0x128   : > { %2113 = vmatmul.mubr.f32.gmra.mrb[34].mxu1 %v535_v35 }
 0x129   : > { %2115 = vmatprep.mubr.f32.mxu1 %v536_v36 }
 0x12c   : > { %2116 = vmatmul.mubr.f32.gmra.mrb[36].mxu1 %v537_v37 }
 0x12d   : > { %2118 = vmatprep.mubr.f32.mxu1 %v538_v38 }
 0x130   : > { %2119 = vmatmul.mubr.f32.gmra.mrb[38].mxu1 %v539_v39 }
 0x131   : > { %2121 = vmatprep.mubr.f32.mxu1 %v540_v40 }
 0x134   : > { %2122 = vmatmul.mubr.f32.gmra.mrb[40].mxu1 %v541_v41 }
 0x135   : > { %2124 = vmatprep.mubr.f32.mxu1 %v542_v42 }
 0x138   : > { %2125 = vmatmul.mubr.f32.gmra.mrb[42].mxu1 %v543_v43 }
 0x139   : > { %2127 = vmatprep.mubr.f32.mxu1 %v544_v44 }
 0x13c   : > { %2128 = vmatmul.mubr.f32.gmra.mrb[44].mxu1 %v545_v45 }
 0x13d   : > { %2130 = vmatprep.mubr.f32.mxu1 %v546_v46 }
 0x140   : > { %2131 = vmatmul.mubr.f32.gmra.mrb[46].mxu1 %v547_v50 }
 0x1b7   : > { %v2031_v9 = vpop.f32.mrb[0].mxu1  ;;  %v2007_v10 = vpop.f32.mrb[0].mxu0 }
 0x1b8   : > { %v3185_v11 = vadd.f32 %v2031_v9, %v3182_v8  ;;  %v717_v12 = vpop.f32.mrb[1].mxu1  ;;  %v643_v13 = vadd.f32 %v2007_v10, %v3182_v8  ;;  %v637_v14 = vpop.f32.mrb[1].mxu0 }
 0x1b9   : > { %v3189_v15 = vadd.f32 %v3182_v8, %v717_v12  ;;  %v638_v16 = vadd.f32 %v3182_v8, %v637_v14 }
 0x1ba   : > { %1469 = vst [vmem:[%s3193_s24 + $0x88] sm:$0xff] %v3185_v11  ;;  %1453 = vst [vmem:[%s3193_s24 + $0x8] sm:$0xff] %v643_v13  ;;  %v1045_v32 = vmul.f32 0.5, %v643_v13 }
 0x1bb   : > { %1468 = vst [vmem:[%s3193_s24 + $0x80] sm:$0xff] %v3189_v15  ;;  %v2034_v17 = vpop.f32.mrb[2].mxu1  ;;  %1452 = vst [vmem:[%s3193_s24] sm:$0xff] %v638_v16  ;;  %v2010_v18 = vpop.f32.mrb[2].mxu0  ;;  %v1044_v34 = vmul.f32 0.5, %v638_v16 }
 0x1bc   : > { %v3202_v19 = vadd.f32 %v2034_v17, %v3182_v8  ;;  %v727_v20 = vpop.f32.mrb[3].mxu1  ;;  %v653_v21 = vadd.f32 %v2010_v18, %v3182_v8  ;;  %v647_v22 = vpop.f32.mrb[3].mxu0  ;;  %2421 = vtanh.f32 %v1045_v32 }
 0x1bd   : > { %v3206_v23 = vadd.f32 %v3182_v8, %v727_v20  ;;  %v648_v24 = vadd.f32 %v3182_v8, %v647_v22  ;;  %2423 = vtanh.f32 %v1044_v34 }
 0x1be   : > { %1471 = vst [vmem:[%s3193_s24 + $0x98] sm:$0xff] %v3202_v19  ;;  %1455 = vst [vmem:[%s3193_s24 + $0x18] sm:$0xff] %v653_v21  ;;  %v1047_v42 = vmul.f32 0.5, %v653_v21 }
 0x1bf   : > { %1470 = vst [vmem:[%s3193_s24 + $0x90] sm:$0xff] %v3206_v23  ;;  %v2037_v25 = vpop.f32.mrb[4].mxu1  ;;  %1454 = vst [vmem:[%s3193_s24 + $0x10] sm:$0xff] %v648_v24  ;;  %v2013_v26 = vpop.f32.mrb[4].mxu0  ;;  %v1046_v44 = vmul.f32 0.5, %v648_v24 }
 0x1c0   : > { %v3216_v27 = vadd.f32 %v2037_v25, %v3182_v8  ;;  %v737_v28 = vpop.f32.mrb[5].mxu1  ;;  %v663_v29 = vadd.f32 %v2013_v26, %v3182_v8  ;;  %v657_v30 = vpop.f32.mrb[5].mxu0  ;;  %2425 = vtanh.f32 %v1047_v42 }
 0x1c1   : > { %v3220_v31 = vadd.f32 %v3182_v8, %v737_v28  ;;  %v658_v33 = vadd.f32 %v3182_v8, %v657_v30  ;;  %2427 = vtanh.f32 %v1046_v44  ;;  %v3295_v30 = vld [vmem:[%s3595_s5] ss:$0 sm:$0xff] }
 0x1c2   : > { %1473 = vst [vmem:[%s3193_s24 + $0xa8] sm:$0xff] %v3216_v27  ;;  %1457 = vst [vmem:[%s3193_s24 + $0x28] sm:$0xff] %v663_v29  ;;  %v1049_v49 = vmul.f32 0.5, %v663_v29 }
 0x1c3   : > { %1472 = vst [vmem:[%s3193_s24 + $0xa0] sm:$0xff] %v3220_v31  ;;  %v2040_v35 = vpop.f32.mrb[6].mxu1  ;;  %1456 = vst [vmem:[%s3193_s24 + $0x20] sm:$0xff] %v658_v33  ;;  %v2016_v36 = vpop.f32.mrb[6].mxu0  ;;  %v1048_v54 = vmul.f32 0.5, %v658_v33 }
 0x1c4   : > { %v3230_v37 = vadd.f32 %v2040_v35, %v3182_v8  ;;  %v747_v38 = vpop.f32.mrb[7].mxu1  ;;  %v673_v39 = vadd.f32 %v2016_v36, %v3182_v8  ;;  %v667_v40 = vpop.f32.mrb[7].mxu0  ;;  %2429 = vtanh.f32 %v1049_v49 }
 0x1c5   : > { %v3234_v41 = vadd.f32 %v3182_v8, %v747_v38  ;;  %v668_v43 = vadd.f32 %v3182_v8, %v667_v40  ;;  %2431 = vtanh.f32 %v1048_v54 }
 0x1c6   : > { %1475 = vst [vmem:[%s3193_s24 + $0xb8] sm:$0xff] %v3230_v37  ;;  %1459 = vst [vmem:[%s3193_s24 + $0x38] sm:$0xff] %v673_v39  ;;  %v1051_v62 = vmul.f32 0.5, %v673_v39  ;;  %v2422_v1 = vpop.eup %2421 }
 0x1c7   : > { %1474 = vst [vmem:[%s3193_s24 + $0xb0] sm:$0xff] %v3234_v41  ;;  %v2043_v45 = vpop.f32.mrb[8].mxu1  ;;  %1458 = vst [vmem:[%s3193_s24 + $0x30] sm:$0xff] %v668_v43  ;;  %v2019_v46 = vpop.f32.mrb[8].mxu0  ;;  %v1050_v0 = vmul.f32 0.5, %v668_v43  ;;  %v1109_v16 = vadd.f32 1.0, %v2422_v1 }
 0x1c8   : > { %v3244_v47 = vadd.f32 %v2043_v45, %v3182_v8  ;;  %v757_v48 = vpop.f32.mrb[9].mxu1  ;;  %v683_v50 = vadd.f32 %v2019_v46, %v3182_v8  ;;  %v677_v51 = vpop.f32.mrb[9].mxu0  ;;  %2433 = vtanh.f32 %v1051_v62 }
 0x1c9   : > { %v3248_v52 = vadd.f32 %v3182_v8, %v757_v48  ;;  %v678_v53 = vadd.f32 %v3182_v8, %v677_v51  ;;  %v2424_v4 = vpop.eup %2423  ;;  %2435 = vtanh.f32 %v1050_v0  ;;  %v1141_v35 = vmul.f32 0.5, %v1109_v16 }
 0x1ca   : > { %1477 = vst [vmem:[%s3193_s24 + $0xc8] sm:$0xff] %v3244_v47  ;;  %1461 = vst [vmem:[%s3193_s24 + $0x48] sm:$0xff] %v683_v50  ;;  %v1053_v12 = vmul.f32 0.5, %v683_v50  ;;  %v2426_v17 = vpop.eup %2425  ;;  %v1108_v20 = vadd.f32 1.0, %v2424_v4 }
 0x1cb   : > { %1476 = vst [vmem:[%s3193_s24 + $0xc0] sm:$0xff] %v3248_v52  ;;  %v2046_v55 = vpop.f32.mrb[10].mxu1  ;;  %1460 = vst [vmem:[%s3193_s24 + $0x40] sm:$0xff] %v678_v53  ;;  %v2022_v56 = vpop.f32.mrb[10].mxu0  ;;  %v1052_v14 = vmul.f32 0.5, %v678_v53  ;;  %v1111_v38 = vadd.f32 1.0, %v2426_v17 }
 0x1cc   : > { %v3258_v57 = vadd.f32 %v2046_v55, %v3182_v8  ;;  %v767_v58 = vpop.f32.mrb[11].mxu1  ;;  %v693_v59 = vadd.f32 %v2022_v56, %v3182_v8  ;;  %v687_v60 = vpop.f32.mrb[11].mxu0  ;;  %2437 = vtanh.f32 %v1053_v12  ;;  %v1140_v40 = vmul.f32 0.5, %v1108_v20 }
 0x1cd   : > { %v3262_v61 = vadd.f32 %v3182_v8, %v767_v58  ;;  %v688_v63 = vadd.f32 %v3182_v8, %v687_v60  ;;  %v2428_v22 = vpop.eup %2427  ;;  %2439 = vtanh.f32 %v1052_v14  ;;  %v1143_v50 = vmul.f32 0.5, %v1111_v38 }
 0x1ce   : > { %1479 = vst [vmem:[%s3193_s24 + $0xd8] sm:$0xff] %v3258_v57  ;;  %1463 = vst [vmem:[%s3193_s24 + $0x58] sm:$0xff] %v693_v59  ;;  %v1055_v32 = vmul.f32 0.5, %v693_v59  ;;  %v2430_v34 = vpop.eup %2429  ;;  %v1110_v42 = vadd.f32 1.0, %v2428_v22 }
 0x1cf   : > { %1478 = vst [vmem:[%s3193_s24 + $0xd0] sm:$0xff] %v3262_v61  ;;  %v2049_v2 = vpop.f32.mrb[12].mxu1  ;;  %1462 = vst [vmem:[%s3193_s24 + $0x50] sm:$0xff] %v688_v63  ;;  %v2025_v3 = vpop.f32.mrb[12].mxu0  ;;  %v1054_v36 = vmul.f32 0.5, %v688_v63  ;;  %v1113_v48 = vadd.f32 1.0, %v2430_v34 }
 0x1d0   : > { %v3272_v5 = vadd.f32 %v2049_v2, %v3182_v8  ;;  %v777_v6 = vpop.f32.mrb[13].mxu1  ;;  %v703_v7 = vadd.f32 %v2025_v3, %v3182_v8  ;;  %v697_v9 = vpop.f32.mrb[13].mxu0  ;;  %2441 = vtanh.f32 %v1055_v32  ;;  %v1142_v56 = vmul.f32 0.5, %v1110_v42 }
 0x1d1   : > { %v3276_v10 = vadd.f32 %v3182_v8, %v777_v6  ;;  %v698_v13 = vadd.f32 %v3182_v8, %v697_v9  ;;  %v2432_v43 = vpop.eup %2431  ;;  %2443 = vtanh.f32 %v1054_v36  ;;  %v1145_v0 = vmul.f32 0.5, %v1113_v48 }
 0x1d2   : > { %1481 = vst [vmem:[%s3193_s24 + $0xe8] sm:$0xff] %v3272_v5  ;;  %1465 = vst [vmem:[%s3193_s24 + $0x68] sm:$0xff] %v703_v7  ;;  %v1057_v46 = vmul.f32 0.5, %v703_v7  ;;  %v2434_v53 = vpop.eup %2433  ;;  %v1112_v58 = vadd.f32 1.0, %v2432_v43 }
 0x1d3   : > { %1480 = vst [vmem:[%s3193_s24 + $0xe0] sm:$0xff] %v3276_v10  ;;  %v2052_v18 = vpop.f32.mrb[14].mxu1  ;;  %1464 = vst [vmem:[%s3193_s24 + $0x60] sm:$0xff] %v698_v13  ;;  %v2028_v21 = vpop.f32.mrb[14].mxu0  ;;  %v1056_v51 = vmul.f32 0.5, %v698_v13  ;;  %v1115_v4 = vadd.f32 1.0, %v2434_v53 }
 0x1d4   : > { %v3286_v24 = vadd.f32 %v2052_v18, %v3182_v8  ;;  %v787_v25 = vpop.f32.mrb[15].mxu1  ;;  %v713_v26 = vadd.f32 %v2028_v21, %v3182_v8  ;;  %v707_v28 = vpop.f32.mrb[15].mxu0  ;;  %2445 = vtanh.f32 %v1057_v46  ;;  %v1144_v12 = vmul.f32 0.5, %v1112_v58 }
 0x1d5   : > { %v3290_v29 = vadd.f32 %v3182_v8, %v787_v25  ;;  %v708_v33 = vadd.f32 %v3182_v8, %v707_v28  ;;  %v2436_v59 = vpop.eup %2435  ;;  %2447 = vtanh.f32 %v1056_v51  ;;  %v1061_v18 = vmul.f32 0.5, %v3185_v11 }
 0x1d6   : > { %1483 = vst [vmem:[%s3193_s24 + $0xf8] sm:$0xff] %v3286_v24  ;;  %1467 = vst [vmem:[%s3193_s24 + $0x78] sm:$0xff] %v713_v26  ;;  %v1059_v1 = vmul.f32 0.5, %v713_v26  ;;  %v2438_v6 = vpop.eup %2437  ;;  %v1114_v13 = vadd.f32 1.0, %v2436_v59  ;;  %v1147_v22 = vmul.f32 0.5, %v1115_v4  ;;  %v1060_v11 = vmul.f32 0.5, %v3189_v15 }
 0x1d7   : > { %1482 = vst [vmem:[%s3193_s24 + $0xf0] sm:$0xff] %v3290_v29  ;;  %v2087_v39 = vpop.f32.mrb[16].mxu1  ;;  %1466 = vst [vmem:[%s3193_s24 + $0x70] sm:$0xff] %v708_v33  ;;  %v1058_v3 = vmul.f32 0.5, %v708_v33  ;;  %v2440_v14 = vpop.eup %2439  ;;  %v1117_v25 = vadd.f32 1.0, %v2438_v6 }
 0x1d8   : > { %v891_v44 = vadd.f32 %v2087_v39, %v3295_v30  ;;  %v885_v45 = vpop.f32.mrb[17].mxu1  ;;  %2449 = vtanh.f32 %v1059_v1  ;;  %v1146_v33 = vmul.f32 0.5, %v1114_v13  ;;  %v1116_v34 = vadd.f32 1.0, %v2440_v14 }
 0x1d9   : > { %v886_v8 = vadd.f32 %v3295_v30, %v885_v45  ;;  %2451 = vtanh.f32 %v1058_v3  ;;  %v1149_v42 = vmul.f32 0.5, %v1117_v25  ;;  %v1063_v45 = vmul.f32 0.5, %v3202_v19 }
 0x1da   : > { %v1173_v49 = vmul.f32 %v1141_v35, %v891_v44  ;;  %1485 = vst [vmem:[%s3307_s12 + $0x8] sm:$0xff] %v891_v44  ;;  %v2442_v26 = vpop.eup %2441  ;;  %2453 = vtanh.f32 %v1061_v18  ;;  %v1148_v15 = vmul.f32 0.5, %v1116_v34  ;;  %v1064_v1 = vmul.f32 0.5, %v3220_v31 }
 0x1db   : > { %v1172_v54 = vmul.f32 %v1140_v40, %v886_v8  ;;  %1484 = vst [vmem:[%s3307_s12] sm:$0xff] %v886_v8  ;;  %v2090_v55 = vpop.f32.mrb[18].mxu1  ;;  %v2444_v35 = vpop.eup %2443  ;;  %v1119_v43 = vadd.f32 1.0, %v2442_v26  ;;  %2455 = vtanh.f32 %v1060_v11 }
 0x1dc   : > { %v901_v60 = vadd.f32 %v2090_v55, %v3295_v30  ;;  %v895_v62 = vpop.f32.mrb[19].mxu1  ;;  %v1118_v48 = vadd.f32 1.0, %v2444_v35  ;;  %v1065_v55 = vmul.f32 0.5, %v3216_v27  ;;  %2457 = vtanh.f32 %v1063_v45 }
 0x1dd   : > { %v896_v63 = vadd.f32 %v3295_v30, %v895_v62  ;;  %2165 = vmatprep.mubr.f32.mxu0 %v1172_v54  ;;  %v1151_v19 = vmul.f32 0.5, %v1119_v43  ;;  %v1070_v45 = vmul.f32 0.5, %v3262_v61  ;;  %v1072_v61 = vmul.f32 0.5, %v3276_v10 }
 0x1de   : > { %v1175_v2 = vmul.f32 %v1143_v50, %v901_v60  ;;  %1487 = vst [vmem:[%s3307_s12 + $0x18] sm:$0xff] %v901_v60  ;;  %2166 = vmatmul.mubr.f32.vlgmr.msra.gmra.mrb[16].mxu0 %v1173_v49  ;;  %v2446_v44 = vpop.eup %2445  ;;  %v1062_v50 = vmul.f32 0.5, %v3206_v23  ;;  %v1150_v23 = vmul.f32 0.5, %v1118_v48 }
 0x1df   : > { %v1174_v7 = vmul.f32 %v1142_v56, %v896_v63  ;;  %1486 = vst [vmem:[%s3307_s12 + $0x10] sm:$0xff] %v896_v63  ;;  %v2093_v9 = vpop.f32.mrb[20].mxu1  ;;  %v2448_v49 = vpop.eup %2447  ;;  %v1121_v58 = vadd.f32 1.0, %v2446_v44 }
 0x1e0   : > { %v911_v16 = vadd.f32 %v2093_v9, %v3295_v30  ;;  %v905_v17 = vpop.f32.mrb[21].mxu1  ;;  %v1120_v63 = vadd.f32 1.0, %v2448_v49  ;;  %2459 = vtanh.f32 %v1062_v50  ;;  %v1067_v9 = vmul.f32 0.5, %v3230_v37 }
 0x1e1   : > { %v906_v20 = vadd.f32 %v3295_v30, %v905_v17  ;;  %2168 = vmatprep.mubr.f32.mxu0 %v1174_v7  ;;  %2461 = vtanh.f32 %v1065_v55  ;;  %v1153_v6 = vmul.f32 0.5, %v1121_v58  ;;  %v1066_v17 = vmul.f32 0.5, %v3234_v41 }
 0x1e2   : > { %v1177_v21 = vmul.f32 %v1145_v0, %v911_v16  ;;  %1489 = vst [vmem:[%s3307_s12 + $0x28] sm:$0xff] %v911_v16  ;;  %2169 = vmatmul.mubr.f32.gmra.mrb[18].mxu0 %v1175_v2  ;;  %v2450_v59 = vpop.eup %2449  ;;  %v1152_v14 = vmul.f32 0.5, %v1120_v63  ;;  %2463 = vtanh.f32 %v1064_v1  ;;  %v1069_v37 = vmul.f32 0.5, %v3244_v47 }
 0x1e3   : > { %v1176_v28 = vmul.f32 %v1144_v12, %v906_v20  ;;  %1488 = vst [vmem:[%s3307_s12 + $0x20] sm:$0xff] %v906_v20  ;;  %v2096_v32 = vpop.f32.mrb[22].mxu1  ;;  %v2452_v0 = vpop.eup %2451  ;;  %v1123_v7 = vadd.f32 1.0, %v2450_v59  ;;  %2465 = vtanh.f32 %v1067_v9  ;;  %v1075_v1 = vmul.f32 0.5, %v3286_v24 }
 0x1e4   : > { %v921_v36 = vadd.f32 %v2096_v32, %v3295_v30  ;;  %v915_v38 = vpop.f32.mrb[23].mxu1  ;;  %v1122_v31 = vadd.f32 1.0, %v2452_v0  ;;  %v2454_v16 = vpop.eup %2453  ;;  %2467 = vtanh.f32 %v1066_v17 }
 0x1e5   : > { %v916_v39 = vadd.f32 %v3295_v30, %v915_v38  ;;  %2171 = vmatprep.mubr.f32.mxu0 %v1176_v28  ;;  %v1155_v26 = vmul.f32 0.5, %v1123_v7  ;;  %v1068_v28 = vmul.f32 0.5, %v3248_v52  ;;  %v1125_v11 = vadd.f32 1.0, %v2454_v16 }
 0x1e6   : > { %v1179_v40 = vmul.f32 %v1147_v22, %v921_v36  ;;  %1491 = vst [vmem:[%s3307_s12 + $0x38] sm:$0xff] %v921_v36  ;;  %2172 = vmatmul.mubr.f32.gmra.mrb[20].mxu0 %v1177_v21  ;;  %v2456_v22 = vpop.eup %2455  ;;  %2469 = vtanh.f32 %v1069_v37  ;;  %v1071_v52 = vmul.f32 0.5, %v3258_v57  ;;  %v1073_v57 = vmul.f32 0.5, %v3272_v5 }
 0x1e7   : > { %v1178_v8 = vmul.f32 %v1146_v33, %v916_v39  ;;  %1490 = vst [vmem:[%s3307_s12 + $0x30] sm:$0xff] %v916_v39  ;;  %v2099_v46 = vpop.f32.mrb[24].mxu1  ;;  %v1154_v33 = vmul.f32 0.5, %v1122_v31  ;;  %v2458_v36 = vpop.eup %2457  ;;  %v1124_v38 = vadd.f32 1.0, %v2456_v22  ;;  %2471 = vtanh.f32 %v1068_v28 }
 0x1e8   : > { %v931_v51 = vadd.f32 %v2099_v46, %v3295_v30  ;;  %v925_v53 = vpop.f32.mrb[25].mxu1  ;;  %v1157_v46 = vmul.f32 0.5, %v1125_v11  ;;  %v1127_v48 = vadd.f32 1.0, %v2458_v36  ;;  %2473 = vtanh.f32 %v1071_v52 }
 0x1e9   : > { %v926_v54 = vadd.f32 %v3295_v30, %v925_v53  ;;  %2174 = vmatprep.mubr.f32.mxu0 %v1178_v8  ;;  %v1156_v50 = vmul.f32 0.5, %v1124_v38  ;;  %2475 = vtanh.f32 %v1070_v45 }
 0x1ea   : > { %v1181_v56 = vmul.f32 %v1149_v42, %v931_v51  ;;  %1493 = vst [vmem:[%s3307_s12 + $0x48] sm:$0xff] %v931_v51  ;;  %2175 = vmatmul.mubr.f32.gmra.mrb[22].mxu0 %v1179_v40  ;;  %v2460_v39 = vpop.eup %2459  ;;  %v1159_v58 = vmul.f32 0.5, %v1127_v48  ;;  %2477 = vtanh.f32 %v1073_v57 }
 0x1eb   : > { %v1180_v60 = vmul.f32 %v1148_v15, %v926_v54  ;;  %1492 = vst [vmem:[%s3307_s12 + $0x40] sm:$0xff] %v926_v54  ;;  %v2102_v62 = vpop.f32.mrb[26].mxu1  ;;  %v2462_v44 = vpop.eup %2461  ;;  %v1126_v51 = vadd.f32 1.0, %v2460_v39  ;;  %2479 = vtanh.f32 %v1072_v61 }
 0x1ec   : > { %v941_v27 = vadd.f32 %v2102_v62, %v3295_v30  ;;  %v935_v2 = vpop.f32.mrb[27].mxu1  ;;  %v2464_v53 = vpop.eup %2463  ;;  %2481 = vtanh.f32 %v1075_v1 }
 0x1ed   : > { %v936_v3 = vadd.f32 %v3295_v30, %v935_v2  ;;  %2177 = vmatprep.mubr.f32.mxu0 %v1180_v60  ;;  %v1129_v60 = vadd.f32 1.0, %v2462_v44  ;;  %v2466_v62 = vpop.eup %2465  ;;  %v1128_v63 = vadd.f32 1.0, %v2464_v53 }
 0x1ee   : > { %v1183_v4 = vmul.f32 %v1151_v19, %v941_v27  ;;  %1495 = vst [vmem:[%s3307_s12 + $0x58] sm:$0xff] %v941_v27  ;;  %2178 = vmatmul.mubr.f32.gmra.mrb[24].mxu0 %v1181_v56  ;;  %v2468_v0 = vpop.eup %2467 }
 0x1ef   : > { %v1182_v12 = vmul.f32 %v1150_v23, %v936_v3  ;;  %1494 = vst [vmem:[%s3307_s12 + $0x50] sm:$0xff] %v936_v3  ;;  %v2105_v13 = vpop.f32.mrb[28].mxu1  ;;  %v1158_v23 = vmul.f32 0.5, %v1126_v51  ;;  %v1161_v7 = vmul.f32 0.5, %v1129_v60  ;;  %v1160_v31 = vmul.f32 0.5, %v1128_v63 }
 0x1f0   : > { %v951_v18 = vadd.f32 %v2105_v13, %v3295_v30  ;;  %v945_v20 = vpop.f32.mrb[29].mxu1  ;;  %v2470_v3 = vpop.eup %2469  ;;  %v1130_v16 = vadd.f32 1.0, %v2468_v0 }
 0x1f1   : > { %v946_v21 = vadd.f32 %v3295_v30, %v945_v20  ;;  %2180 = vmatprep.mubr.f32.mxu0 %v1182_v12  ;;  %v1131_v12 = vadd.f32 1.0, %v2466_v62  ;;  %v2472_v13 = vpop.eup %2471  ;;  %v1133_v22 = vadd.f32 1.0, %v2470_v3 }
 0x1f2   : > { %v1185_v25 = vmul.f32 %v1153_v6, %v951_v18  ;;  %1497 = vst [vmem:[%s3307_s12 + $0x68] sm:$0xff] %v951_v18  ;;  %2181 = vmatmul.mubr.f32.gmra.mrb[26].mxu0 %v1183_v4  ;;  %v1074_v4 = vmul.f32 0.5, %v3290_v29  ;;  %v2474_v37 = vpop.eup %2473  ;;  %v1132_v28 = vadd.f32 1.0, %v2472_v13 }
 0x1f3   : > { %v1184_v32 = vmul.f32 %v1152_v14, %v946_v21  ;;  %1496 = vst [vmem:[%s3307_s12 + $0x60] sm:$0xff] %v946_v21  ;;  %v2108_v41 = vpop.f32.mrb[30].mxu1  ;;  %v1163_v20 = vmul.f32 0.5, %v1131_v12  ;;  %v1165_v36 = vmul.f32 0.5, %v1133_v22  ;;  %v1135_v38 = vadd.f32 1.0, %v2474_v37 }
 0x1f4   : > { %v961_v34 = vadd.f32 %v2108_v41, %v3295_v30  ;;  %v955_v35 = vpop.f32.mrb[31].mxu1  ;;  %2483 = vtanh.f32 %v1074_v4  ;;  %v1164_v52 = vmul.f32 0.5, %v1132_v28 }
 0x1f5   : > { %v956_v47 = vadd.f32 %v3295_v30, %v955_v35  ;;  %2183 = vmatprep.mubr.f32.mxu0 %v1184_v32  ;;  %v2476_v32 = vpop.eup %2475 }
 0x1f6   : > { %v1187_v40 = vmul.f32 %v1155_v26, %v961_v34  ;;  %1499 = vst [vmem:[%s3307_s12 + $0x78] sm:$0xff] %v961_v34  ;;  %2184 = vmatmul.mubr.f32.gmra.mrb[28].mxu0 %v1185_v25  ;;  %v1162_v26 = vmul.f32 0.5, %v1130_v16  ;;  %v2478_v35 = vpop.eup %2477 }
 0x1f7   : > { %v1186_v42 = vmul.f32 %v1154_v33, %v956_v47  ;;  %1498 = vst [vmem:[%s3307_s12 + $0x70] sm:$0xff] %v956_v47  ;;  %v2111_v43 = vpop.f32.mrb[32].mxu1  ;;  %v2480_v39 = vpop.eup %2479  ;;  %v1137_v48 = vadd.f32 1.0, %v2478_v35 }
 0x1f8   : > { %v971_v8 = vadd.f32 %v2111_v43, %v3295_v30  ;;  %v965_v15 = vpop.f32.mrb[33].mxu1  ;;  %v1136_v53 = vadd.f32 1.0, %v2480_v39 }
 0x1f9   : > { %v966_v49 = vadd.f32 %v3295_v30, %v965_v15  ;;  %2186 = vmatprep.mubr.f32.mxu0 %v1186_v42  ;;  %v1134_v42 = vadd.f32 1.0, %v2476_v32 }
 0x1fa   : > { %v1189_v54 = vmul.f32 %v1157_v46, %v971_v8  ;;  %1501 = vst [vmem:[%s3307_s12 + $0x88] sm:$0xff] %v971_v8  ;;  %2187 = vmatmul.mubr.f32.gmra.mrb[30].mxu0 %v1187_v40  ;;  %v1167_v46 = vmul.f32 0.5, %v1135_v38  ;;  %v1168_v62 = vmul.f32 0.5, %v1136_v53 }
 0x1fb   : > { %v1188_v55 = vmul.f32 %v1156_v50, %v966_v49  ;;  %1500 = vst [vmem:[%s3307_s12 + $0x80] sm:$0xff] %v966_v49  ;;  %v2114_v56 = vpop.f32.mrb[34].mxu1  ;;  %v2482_v49 = vpop.eup %2481  ;;  %v1166_v51 = vmul.f32 0.5, %v1134_v42 }
 0x1fc   : > { %v981_v19 = vadd.f32 %v2114_v56, %v3295_v30  ;;  %v975_v59 = vpop.f32.mrb[35].mxu1 }
 0x1fd   : > { %v976_v5 = vadd.f32 %v3295_v30, %v975_v59  ;;  %2189 = vmatprep.mubr.f32.mxu0 %v1188_v55  ;;  %v1139_v59 = vadd.f32 1.0, %v2482_v49 }
 0x1fe   : > { %v1191_v10 = vmul.f32 %v1159_v58, %v981_v19  ;;  %1503 = vst [vmem:[%s3307_s12 + $0x98] sm:$0xff] %v981_v19  ;;  %2190 = vmatmul.mubr.f32.gmra.mrb[32].mxu0 %v1189_v54  ;;  %v2484_v57 = vpop.eup %2483  ;;  %v1169_v19 = vmul.f32 0.5, %v1137_v48 }
 0x1ff   : > { %v1190_v27 = vmul.f32 %v1158_v23, %v976_v5  ;;  %1502 = vst [vmem:[%s3307_s12 + $0x90] sm:$0xff] %v976_v5  ;;  %v2117_v2 = vpop.f32.mrb[36].mxu1  ;;  %v1138_v5 = vadd.f32 1.0, %v2484_v57  ;;  %v1171_v1 = vmul.f32 0.5, %v1139_v59 }
 0x200   : > { %v991_v6 = vadd.f32 %v2117_v2, %v3295_v30  ;;  %v985_v9 = vpop.f32.mrb[37].mxu1 }
 0x201   : > { %v986_v14 = vadd.f32 %v3295_v30, %v985_v9  ;;  %2192 = vmatprep.mubr.f32.mxu0 %v1190_v27  ;;  %v1170_v3 = vmul.f32 0.5, %v1138_v5 }
 0x202   : > { %v1193_v24 = vmul.f32 %v1161_v7, %v991_v6  ;;  %1505 = vst [vmem:[%s3307_s12 + $0xa8] sm:$0xff] %v991_v6  ;;  %2193 = vmatmul.mubr.f32.gmra.mrb[34].mxu0 %v1191_v10 }
 0x203   : > { %v1192_v17 = vmul.f32 %v1160_v31, %v986_v14  ;;  %1504 = vst [vmem:[%s3307_s12 + $0xa0] sm:$0xff] %v986_v14  ;;  %v2120_v18 = vpop.f32.mrb[38].mxu1 }
 0x204   : > { %v1001_v29 = vadd.f32 %v2120_v18, %v3295_v30  ;;  %v995_v21 = vpop.f32.mrb[39].mxu1 }
 0x205   : > { %v996_v25 = vadd.f32 %v3295_v30, %v995_v21  ;;  %2195 = vmatprep.mubr.f32.mxu0 %v1192_v17 }
 0x206   : > { %v1195_v41 = vmul.f32 %v1163_v20, %v1001_v29  ;;  %1507 = vst [vmem:[%s3307_s12 + $0xb8] sm:$0xff] %v1001_v29  ;;  %2196 = vmatmul.mubr.f32.gmra.mrb[36].mxu0 %v1193_v24 }
 0x207   : > { %v1194_v33 = vmul.f32 %v1162_v26, %v996_v25  ;;  %1506 = vst [vmem:[%s3307_s12 + $0xb0] sm:$0xff] %v996_v25  ;;  %v2123_v34 = vpop.f32.mrb[40].mxu1 }
 0x208   : > { %v1011_v11 = vadd.f32 %v2123_v34, %v3295_v30  ;;  %v1005_v47 = vpop.f32.mrb[41].mxu1 }
 0x209   : > { %v1006_v40 = vadd.f32 %v3295_v30, %v1005_v47  ;;  %2198 = vmatprep.mubr.f32.mxu0 %v1194_v33 }
 0x20a   : > { %v1197_v43 = vmul.f32 %v1165_v36, %v1011_v11  ;;  %1509 = vst [vmem:[%s3307_s12 + $0xc8] sm:$0xff] %v1011_v11  ;;  %2199 = vmatmul.mubr.f32.gmra.mrb[38].mxu0 %v1195_v41 }
 0x20b   : > { %v1196_v44 = vmul.f32 %v1164_v52, %v1006_v40  ;;  %1508 = vst [vmem:[%s3307_s12 + $0xc0] sm:$0xff] %v1006_v40  ;;  %v2126_v45 = vpop.f32.mrb[42].mxu1 }
 0x20c   : > { %v1021_v8 = vadd.f32 %v2126_v45, %v3295_v30  ;;  %v1015_v15 = vpop.f32.mrb[43].mxu1 }
 0x20d   : > { %v1016_v50 = vadd.f32 %v3295_v30, %v1015_v15  ;;  %2201 = vmatprep.mubr.f32.mxu0 %v1196_v44 }
 0x20e   : > { %v1199_v54 = vmul.f32 %v1167_v46, %v1021_v8  ;;  %1511 = vst [vmem:[%s3307_s12 + $0xd8] sm:$0xff] %v1021_v8  ;;  %2202 = vmatmul.mubr.f32.gmra.mrb[40].mxu0 %v1197_v43 }
 0x20f   : > { %v1198_v61 = vmul.f32 %v1166_v51, %v1016_v50  ;;  %1510 = vst [vmem:[%s3307_s12 + $0xd0] sm:$0xff] %v1016_v50  ;;  %v2129_v55 = vpop.f32.mrb[44].mxu1 }
 0x210   : > { %v1031_v56 = vadd.f32 %v2129_v55, %v3295_v30  ;;  %v1025_v58 = vpop.f32.mrb[45].mxu1 }
 0x211   : > { %v1026_v60 = vadd.f32 %v3295_v30, %v1025_v58  ;;  %2204 = vmatprep.mubr.f32.mxu0 %v1198_v61 }
 0x212   : > { %v1201_v23 = vmul.f32 %v1169_v19, %v1031_v56  ;;  %1513 = vst [vmem:[%s3307_s12 + $0xe8] sm:$0xff] %v1031_v56  ;;  %2205 = vmatmul.mubr.f32.gmra.mrb[42].mxu0 %v1199_v54 }
 0x213   : > { %v1200_v63 = vmul.f32 %v1168_v62, %v1026_v60  ;;  %1512 = vst [vmem:[%s3307_s12 + $0xe0] sm:$0xff] %v1026_v60  ;;  %v2132_v0 = vpop.f32.mrb[46].mxu1 }
 0x214   : > { %v1041_v10 = vadd.f32 %v2132_v0, %v3295_v30  ;;  %v1035_v27 = vpop.f32.mrb[47].mxu1 }
 0x215   : > { %v1036_v2 = vadd.f32 %v3295_v30, %v1035_v27  ;;  %2207 = vmatprep.mubr.f32.mxu0 %v1200_v63 }
 0x216   : > { %v1203_v4 = vmul.f32 %v1171_v1, %v1041_v10  ;;  %1515 = vst [vmem:[%s3307_s12 + $0xf8] sm:$0xff] %v1041_v10  ;;  %2208 = vmatmul.mubr.f32.gmra.mrb[44].mxu0 %v1201_v23 }
 0x217   : > { %v1202_v6 = vmul.f32 %v1170_v3, %v1036_v2  ;;  %1514 = vst [vmem:[%s3307_s12 + $0xf0] sm:$0xff] %v1036_v2 }
 0x219   : > { %2210 = vmatprep.mubr.f32.mxu0 %v1202_v6 }
 0x21a   : > { %2211 = vmatmul.mubr.f32.gmra.mrb[46].mxu0 %v1203_v4 }
 0x21b   : > { %2642 = shalt.err (!%p2639_p3)
}
 0x21c   : > { %s2643_s17 = scalar_lea.hbm %s3394_s28, 4096  ;;  %s2647_s19 = scalar_lea.hbm %s3599_s9, 8192 }
 0x21d   : > { %p2644_p9 = scmp.ne.s32.totalorder %s3394_s28, %s2643_s17  ;;  %p2648_p7 = scmp.lt.u32.totalorder %s3394_s28, %s3599_s9 }
 0x21e   : > { %p2649_p12 = scmp.lt.u32.totalorder %s2647_s19, %s2643_s17  ;;  %p2651_p2 = scmp.lt.u32.totalorder %s2643_s17, %s3394_s28 }
 0x21f   : > { %p2645_p13 = pnand %p2644_p9, %p2992_p5 }
 0x220   : > { %p2650_p1 = por %p2649_p12, %p2648_p7 }
 0x221   : > { %p2646_p11 = pneg %p2645_p13 }
 0x222   : > { %p2652_p4 = por %p2651_p2, %p2650_p1 }
 0x224   : > { %p2653_p0 = pnand %p2652_p4, %p2646_p11 }
 0x226   : > { %2656 = shalt.err (!%p2653_p0)
}
 0x227   : > { %s2777_s23 = smov 128   ;;  %s2778_s12 = smov 8  }
 0x228   : > { %2342 = dma.vmem_to_hbm [thread:$0]  (%p2992_p5), %s3397_s29, 4096, %s3394_s28, %s3401_s26, %s2777_s23, %s2777_s23, %s2778_s12  }
 0x229   : > { %s3432_s0 = scalar_lea.hbm %s3598_s8, %s3388_s11  ;;  %s1572_s7 = sshll.u32 %s3193_s24, 4  ;;  %s3435_s7 = int_to_ptr.vmem [resolvable:$true] %s1572_s7 }
 0x22a   : > { %s1549_s30 = scalar_lea.sflag [#allocation4], %s3084_s13  ;;  %s2657_s25 = scalar_lea.vmem %s3435_s7, 4096 }
 0x22b   : > { %p2658_p8 = scmp.ne.s32.totalorder %s3435_s7, %s2657_s25  ;;  %s2779_s17 = smov [#allocation11]  }
 0x22c   : > { %s2661_s21 = sshll.u32 %s2779_s17, 4  ;;  %s2662_s21 = int_to_ptr.vmem [resolvable:$false] %s2661_s21 }
 0x22d   : > { %p2659_p6 = pnand %p2658_p8, %p2992_p5  ;;  %s2663_s28 = scalar_lea.vmem %s2662_s21, 8192 }
 0x22e   : > { %p2664_p3 = scmp.lt.s32.totalorder %s3435_s7, %s2662_s21  ;;  %p2665_p9 = scmp.lt.s32.totalorder %s2663_s28, %s2657_s25 }
 0x22f   : > { %p2660_p10 = pneg %p2659_p6 }
 0x230   : > { %p2666_p13 = por %p2665_p9, %p2664_p3 }
 0x232   : > { %p2667_p11 = pnand %p2666_p13, %p2660_p10 }
 0x234   : > { %2670 = shalt.err (!%p2667_p11)
}
 0x235   : > { %s2671_s24 = scalar_lea.hbm %s3432_s0, 4096  ;;  %s2675_s19 = scalar_lea.hbm %s3598_s8, 8192 }
 0x236   : > { %p2672_p7 = scmp.ne.s32.totalorder %s3432_s0, %s2671_s24  ;;  %p2676_p2 = scmp.lt.u32.totalorder %s3432_s0, %s3598_s8 }
 0x237   : > { %p2677_p4 = scmp.lt.u32.totalorder %s2675_s19, %s2671_s24  ;;  %p2679_p8 = scmp.lt.u32.totalorder %s2671_s24, %s3432_s0 }
 0x238   : > { %p2673_p12 = pnand %p2672_p7, %p2992_p5 }
 0x239   : > { %p2678_p0 = por %p2677_p4, %p2676_p2 }
 0x23a   : > { %p2674_p1 = pneg %p2673_p12 }
 0x23b   : > { %p2680_p6 = por %p2679_p8, %p2678_p0 }
 0x23d   : > { %p2681_p10 = pnand %p2680_p6, %p2674_p1 }
 0x23f   : > { %2684 = shalt.err (!%p2681_p10)
}
 0x240   : > { %2341 = dma.vmem_to_hbm [thread:$0]  (%p2992_p5), %s3435_s7, 4096, %s3432_s0, %s1549_s30, %s2777_s23, %s2777_s23, %s2778_s12  }
 0x241   : > { %s3641_s25 = sld [smem:[#allocation28_spill]]  ;;  %s3472_s17 = scalar_lea.vmem [#allocation14], %s3087_s27 }
 0x242   : > { %s1604_s13 = sshll.u32 %s3472_s17, 4  ;;  %s3642_s7 = sld [smem:[#allocation29_spill]]  ;;  %s3541_s13 = int_to_ptr.vmem [resolvable:$true] %s1604_s13 }
 0x243   : > { %s2685_s21 = scalar_lea.vmem %s3541_s13, 4096  ;;  %s2780_s28 = smov [#allocation14]  }
 0x244   : > { %p2686_p3 = scmp.ne.s32.totalorder %s3541_s13, %s2685_s21  ;;  %s2689_s24 = sshll.u32 %s2780_s28, 4  ;;  %s2690_s24 = int_to_ptr.vmem [resolvable:$false] %s2689_s24 }
 0x245   : > { %s2691_s29 = scalar_lea.vmem %s2690_s24, 8192  ;;  %p2692_p11 = scmp.lt.s32.totalorder %s3541_s13, %s2690_s24 }
 0x246   : > { %p2687_p9 = pnand %p2686_p3, %p2992_p5  ;;  %p2693_p7 = scmp.lt.s32.totalorder %s2691_s29, %s2685_s21 }
 0x247   : > { %v3467_v30 = vld [vmem:[%s3641_s25] ss:$0 sm:$0xff] }
 0x248   : > { %s3539_s30 = scalar_lea.hbm %s3642_s7, %s3388_s11  ;;  %p2688_p13 = pneg %p2687_p9 }
 0x249   : > { %p2694_p12 = por %p2693_p7, %p2692_p11 }
 0x24b   : > { %p2695_p1 = pnand %p2694_p12, %p2688_p13 }
 0x2b1   : > { %v2167_v7 = vpop.f32.mrb[16].mxu0 }
 0x2b2   : > { %v1299_v9 = vadd.f32 %v2167_v7, %v3467_v30  ;;  %v1293_v12 = vpop.f32.mrb[17].mxu0 }
 0x2b3   : > { %v1294_v13 = vadd.f32 %v3467_v30, %v1293_v12 }
 0x2b4   : > { %1517 = vst [vmem:[%s3472_s17 + $0x8] sm:$0xff] %v1299_v9 }
 0x2b5   : > { %1516 = vst [vmem:[%s3472_s17] sm:$0xff] %v1294_v13  ;;  %v2170_v14 = vpop.f32.mrb[18].mxu0 }
 0x2b6   : > { %v1309_v31 = vadd.f32 %v2170_v14, %v3467_v30  ;;  %v1303_v16 = vpop.f32.mrb[19].mxu0 }
 0x2b7   : > { %v1304_v24 = vadd.f32 %v3467_v30, %v1303_v16 }
 0x2b8   : > { %1519 = vst [vmem:[%s3472_s17 + $0x18] sm:$0xff] %v1309_v31 }
 0x2b9   : > { %1518 = vst [vmem:[%s3472_s17 + $0x10] sm:$0xff] %v1304_v24  ;;  %v2173_v17 = vpop.f32.mrb[20].mxu0 }
 0x2ba   : > { %v1319_v18 = vadd.f32 %v2173_v17, %v3467_v30  ;;  %v1313_v29 = vpop.f32.mrb[21].mxu0 }
 0x2bb   : > { %v1314_v20 = vadd.f32 %v3467_v30, %v1313_v29 }
 0x2bc   : > { %1521 = vst [vmem:[%s3472_s17 + $0x28] sm:$0xff] %v1319_v18 }
 0x2bd   : > { %1520 = vst [vmem:[%s3472_s17 + $0x20] sm:$0xff] %v1314_v20  ;;  %v2176_v21 = vpop.f32.mrb[22].mxu0 }
 0x2be   : > { %v1329_v22 = vadd.f32 %v2176_v21, %v3467_v30  ;;  %v1323_v37 = vpop.f32.mrb[23].mxu0 }
 0x2bf   : > { %v1324_v25 = vadd.f32 %v3467_v30, %v1323_v37 }
 0x2c0   : > { %1523 = vst [vmem:[%s3472_s17 + $0x38] sm:$0xff] %v1329_v22 }
 0x2c1   : > { %1522 = vst [vmem:[%s3472_s17 + $0x30] sm:$0xff] %v1324_v25  ;;  %v2179_v26 = vpop.f32.mrb[24].mxu0 }
 0x2c2   : > { %v1339_v28 = vadd.f32 %v2179_v26, %v3467_v30  ;;  %v1333_v32 = vpop.f32.mrb[25].mxu0 }
 0x2c3   : > { %v1334_v41 = vadd.f32 %v3467_v30, %v1333_v32 }
 0x2c4   : > { %1525 = vst [vmem:[%s3472_s17 + $0x48] sm:$0xff] %v1339_v28 }
 0x2c5   : > { %1524 = vst [vmem:[%s3472_s17 + $0x40] sm:$0xff] %v1334_v41  ;;  %v2182_v33 = vpop.f32.mrb[26].mxu0 }
 0x2c6   : > { %v1349_v34 = vadd.f32 %v2182_v33, %v3467_v30  ;;  %v1343_v35 = vpop.f32.mrb[27].mxu0 }
 0x2c7   : > { %v1344_v11 = vadd.f32 %v3467_v30, %v1343_v35 }
 0x2c8   : > { %1527 = vst [vmem:[%s3472_s17 + $0x58] sm:$0xff] %v1349_v34 }
 0x2c9   : > { %1526 = vst [vmem:[%s3472_s17 + $0x50] sm:$0xff] %v1344_v11  ;;  %v2185_v36 = vpop.f32.mrb[28].mxu0 }
 0x2ca   : > { %v1359_v47 = vadd.f32 %v2185_v36, %v3467_v30  ;;  %v1353_v38 = vpop.f32.mrb[29].mxu0 }
 0x2cb   : > { %v1354_v39 = vadd.f32 %v3467_v30, %v1353_v38 }
 0x2cc   : > { %1529 = vst [vmem:[%s3472_s17 + $0x68] sm:$0xff] %v1359_v47 }
 0x2cd   : > { %1528 = vst [vmem:[%s3472_s17 + $0x60] sm:$0xff] %v1354_v39  ;;  %v2188_v40 = vpop.f32.mrb[30].mxu0 }
 0x2ce   : > { %v1369_v52 = vadd.f32 %v2188_v40, %v3467_v30  ;;  %v1363_v42 = vpop.f32.mrb[31].mxu0 }
 0x2cf   : > { %v1364_v43 = vadd.f32 %v3467_v30, %v1363_v42 }
 0x2d0   : > { %1531 = vst [vmem:[%s3472_s17 + $0x78] sm:$0xff] %v1369_v52 }
 0x2d1   : > { %1530 = vst [vmem:[%s3472_s17 + $0x70] sm:$0xff] %v1364_v43  ;;  %v2191_v44 = vpop.f32.mrb[32].mxu0 }
 0x2d2   : > { %v1379_v45 = vadd.f32 %v2191_v44, %v3467_v30  ;;  %v1373_v8 = vpop.f32.mrb[33].mxu0 }
 0x2d3   : > { %v1374_v46 = vadd.f32 %v3467_v30, %v1373_v8 }
 0x2d4   : > { %1533 = vst [vmem:[%s3472_s17 + $0x88] sm:$0xff] %v1379_v45 }
 0x2d5   : > { %1532 = vst [vmem:[%s3472_s17 + $0x80] sm:$0xff] %v1374_v46  ;;  %v2194_v15 = vpop.f32.mrb[34].mxu0 }
 0x2d6   : > { %v1389_v48 = vadd.f32 %v2194_v15, %v3467_v30  ;;  %v1383_v49 = vpop.f32.mrb[35].mxu0 }
 0x2d7   : > { %v1384_v50 = vadd.f32 %v3467_v30, %v1383_v49 }
 0x2d8   : > { %1535 = vst [vmem:[%s3472_s17 + $0x98] sm:$0xff] %v1389_v48 }
 0x2d9   : > { %1534 = vst [vmem:[%s3472_s17 + $0x90] sm:$0xff] %v1384_v50  ;;  %v2197_v51 = vpop.f32.mrb[36].mxu0 }
 0x2da   : > { %v1399_v53 = vadd.f32 %v2197_v51, %v3467_v30  ;;  %v1393_v57 = vpop.f32.mrb[37].mxu0 }
 0x2db   : > { %v1394_v54 = vadd.f32 %v3467_v30, %v1393_v57 }
 0x2dc   : > { %1537 = vst [vmem:[%s3472_s17 + $0xa8] sm:$0xff] %v1399_v53 }
 0x2dd   : > { %1536 = vst [vmem:[%s3472_s17 + $0xa0] sm:$0xff] %v1394_v54  ;;  %v2200_v61 = vpop.f32.mrb[38].mxu0 }
 0x2de   : > { %v1409_v55 = vadd.f32 %v2200_v61, %v3467_v30  ;;  %v1403_v56 = vpop.f32.mrb[39].mxu0 }
 0x2df   : > { %v1404_v19 = vadd.f32 %v3467_v30, %v1403_v56 }
 0x2e0   : > { %1539 = vst [vmem:[%s3472_s17 + $0xb8] sm:$0xff] %v1409_v55 }
 0x2e1   : > { %1538 = vst [vmem:[%s3472_s17 + $0xb0] sm:$0xff] %v1404_v19  ;;  %v2203_v58 = vpop.f32.mrb[40].mxu0 }
 0x2e2   : > { %v1419_v59 = vadd.f32 %v2203_v58, %v3467_v30  ;;  %v1413_v60 = vpop.f32.mrb[41].mxu0 }
 0x2e3   : > { %v1414_v62 = vadd.f32 %v3467_v30, %v1413_v60 }
 0x2e4   : > { %1541 = vst [vmem:[%s3472_s17 + $0xc8] sm:$0xff] %v1419_v59 }
 0x2e5   : > { %1540 = vst [vmem:[%s3472_s17 + $0xc0] sm:$0xff] %v1414_v62  ;;  %v2206_v5 = vpop.f32.mrb[42].mxu0 }
 0x2e6   : > { %v1429_v23 = vadd.f32 %v2206_v5, %v3467_v30  ;;  %v1423_v63 = vpop.f32.mrb[43].mxu0 }
 0x2e7   : > { %v1424_v0 = vadd.f32 %v3467_v30, %v1423_v63 }
 0x2e8   : > { %1543 = vst [vmem:[%s3472_s17 + $0xd8] sm:$0xff] %v1429_v23 }
 0x2e9   : > { %1542 = vst [vmem:[%s3472_s17 + $0xd0] sm:$0xff] %v1424_v0  ;;  %v2209_v10 = vpop.f32.mrb[44].mxu0 }
 0x2ea   : > { %v1439_v1 = vadd.f32 %v2209_v10, %v3467_v30  ;;  %v1433_v27 = vpop.f32.mrb[45].mxu0 }
 0x2eb   : > { %v1434_v2 = vadd.f32 %v3467_v30, %v1433_v27 }
 0x2ec   : > { %1545 = vst [vmem:[%s3472_s17 + $0xe8] sm:$0xff] %v1439_v1 }
 0x2ed   : > { %1544 = vst [vmem:[%s3472_s17 + $0xe0] sm:$0xff] %v1434_v2  ;;  %v2212_v3 = vpop.f32.mrb[46].mxu0 }
 0x2ee   : > { %v1449_v4 = vadd.f32 %v2212_v3, %v3467_v30  ;;  %v1443_v6 = vpop.f32.mrb[47].mxu0 }
 0x2ef   : > { %v1444_v7 = vadd.f32 %v3467_v30, %v1443_v6 }
 0x2f0   : > { %1547 = vst [vmem:[%s3472_s17 + $0xf8] sm:$0xff] %v1449_v4 }
 0x2f1   : > { %1546 = vst [vmem:[%s3472_s17 + $0xf0] sm:$0xff] %v1444_v7 }
 0x2f2   : > { %2698 = shalt.err (!%p2695_p1)
}
 0x2f3   : > { %s2699_s11 = scalar_lea.hbm %s3539_s30, 4096  ;;  %s2703_s6 = scalar_lea.hbm %s3642_s7, 8192 }
 0x2f4   : > { %p2700_p2 = scmp.ne.s32.totalorder %s3539_s30, %s2699_s11  ;;  %p2704_p8 = scmp.lt.u32.totalorder %s3539_s30, %s3642_s7 }
 0x2f5   : > { %p2705_p6 = scmp.lt.u32.totalorder %s2703_s6, %s2699_s11  ;;  %p2707_p3 = scmp.lt.u32.totalorder %s2699_s11, %s3539_s30 }
 0x2f6   : > { %p2701_p4 = pnand %p2700_p2, %p2992_p5 }
 0x2f7   : > { %p2706_p10 = por %p2705_p6, %p2704_p8 }
 0x2f8   : > { %p2702_p0 = pneg %p2701_p4 }
 0x2f9   : > { %p2708_p9 = por %p2707_p3, %p2706_p10 }
 0x2fb   : > { %p2709_p13 = pnand %p2708_p9, %p2702_p0 }
 0x2fd   : > { %2712 = shalt.err (!%p2709_p13)
}
 0x2fe   : > { %2343 = dma.vmem_to_hbm [thread:$0]  (%p2992_p5), %s3541_s13, 4096, %s3539_s30, %s3401_s26, %s2777_s23, %s2777_s23, %s2778_s12  }
 0x2ff PF: > { %s3643_s4 = sld [smem:[#allocation21_spill]]  ;;  %s3644_s25 = sld [smem:[#allocation22_spill]] }
 0x300   : > { %p3646_p7 = scmp.ge.s32.totalorder %s2767_s16, 2 }
 0x305   : > { %s1619_s17 = sand.u32 1, %s3643_s4   ;;  %p3645_p11 = scmp.ne.s32.totalorder %s3644_s25, 0 }
 0x306   : > { %s1620_s27 = scalar_lea.sflag [#allocation4], %s1619_s17 }
 0x307   : > { %p2365_p12 = pnand %p3646_p7, %p3645_p11 }
 0x309   : > { %2746 = dma.done.wait (!%p2365_p12), %s1620_s27, 4096  }
 0x30a   : > { %2748 = vsyncadd (!%p2365_p12), %s1620_s27, 4294963200  ;;  %s3647_s20 = sadd.s32 4294967294, %s2767_s16  }
 0x30b   : > { %s1628_s0 = sand.u32 1, %s3647_s20  }
 0x30c   : > { %s1629_s21 = scalar_lea.sflag [#allocation13], %s1628_s0 }
 0x30d   : > { %2750 = dma.done.wait (!%p2365_p12), %s1629_s21, 8192  }
 0x30e   : > { %2752 = vsyncadd (!%p2365_p12), %s1629_s21, 4294959104  ;;  %s3648_s26 = sld [smem:[#allocation23_spill]]  ;;  %p31_p5 = scmp.ge.s32.totalorder %s2978_s18, 4  }
 0x30f   : > { %s3649_s13 = smov %s2759_s14  ;;  %s3650_s14 = smov %s2763_s15 }
 0x310   : > { %s3652_s16 = smov %s2978_s18  ;;  %33 = sbr.rel (!%p31_p5) target bundleno = 17 (0x11), region = 154 }
 0x314   : > { %s3651_s15 = smov %s3648_s26 }
 0x317   :  { %1643 = vsyncpa [#allocation3], 1 }
 0x318   :  { %1645 = vsyncpa [#allocation3 + $0x1], 1 }
 0x319   :  { %1646 = vsyncpa [#allocation6], 1 }
 0x31a   :  { %1648 = vsyncpa [#allocation6 + $0x1], 1 }
 0x31b   :  { %1649 = vsyncpa [#allocation9], 1 }
 0x31c   :  { %1650 = vsyncpa [#allocation4], 1 }
 0x31d   :  { %1652 = vsyncpa [#allocation4 + $0x1], 1 }
 0x31e   :  { %1653 = vsyncpa [#allocation13], 1 }
 0x31f   :  { %1655 = vsyncpa [#allocation13 + $0x1], 1 }

</bundles_post_ra>
